<compile_context>
chip_gen: v7x
topology: tpu7x:2x2x1
jax: 0.10.0
libtpu: 0.0.40
codegen_flags: <defaults>
</compile_context>

<pallas_src>
import jax
import jax.numpy as jnp
from jax.experimental import pallas as pl
from jax.experimental.pallas import tpu as pltpu


C = 8              # channels per conv layer
GW = 16            # canvas spatial grid: 14 real positions + 2 zero-pad borders
LANES = GW * C     # 128
TB = 8             # images per grid tile (multiple of 8 -> sublane-aligned shifts)
INT = 14 * TB      # interior canvas rows per tile (spatial groups 1..14) = 112
CROWS = 17 * TB    # canvas rows: groups 0..15 plus TB slack rows (conv4's +2 shift)
CM = INT // 2      # conv M-chunk (56 rows): bounds vreg pressure of the wide-K LHS


# --------------------------- fused Pallas kernel --------------------------- #

def _fused_kernel(p1_ref, w1_ref, w2_ref, w3_ref, w4_ref, wl1_ref, wl2_ref,
                  bias_ref, out_ref, ca_ref, cb_ref):
    f32 = jnp.float32

    # Border spatial groups (0, 15) and the trailing slack group must be zero:
    # they provide the conv zero-padding for the row-shifted reads.  Interior
    # groups 1..14 are fully overwritten below, so only these 40 rows per
    # canvas are cleared (cheap targeted stores, no full-canvas zero / mask).
    for c_ref in (ca_ref, cb_ref):
        c_ref[0:TB, :] = jnp.zeros((TB, LANES), f32)
        c_ref[15 * TB:CROWS, :] = jnp.zeros((2 * TB, LANES), f32)

    # conv1 + relu1: patch rows (built outside from the raw input) are already
    # in interior canvas-row order, so this is a single lane-dense GEMM.
    a1 = jnp.dot(p1_ref[...], w1_ref[...], preferred_element_type=f32)
    ca_ref[TB:15 * TB, :] = jnp.maximum(a1 + bias_ref[0:1, :], 0.0)

    def conv_banded(src_ref, w_ref, dst_ref, kh, bias_row):
        # Output group g (1..14) reads input groups g-1 .. g+kh-2.  The kh
        # shifted windows are concatenated along K so each 56-row chunk is one
        # wide-K (CM, kh*128) x (kh*128, 128) dot.  All slice starts are
        # multiples of 8 (TB=8), so the shifted reads are aligned loads.
        bias = bias_ref[bias_row:bias_row + 1, :]
        for c0 in range(0, INT, CM):
            lhs = jnp.concatenate(
                [src_ref[di * TB + c0:di * TB + c0 + CM, :] for di in range(kh)],
                axis=1)
            acc = jnp.dot(lhs, w_ref[...], preferred_element_type=f32)
            dst_ref[TB + c0:TB + c0 + CM, :] = jnp.maximum(acc + bias, 0.0)

    conv_banded(ca_ref, w2_ref, cb_ref, 3, 1)   # conv2 + relu2
    conv_banded(cb_ref, w3_ref, ca_ref, 3, 2)   # conv3 + relu3
    conv_banded(ca_ref, w4_ref, cb_ref, 4, 3)   # conv4 + relu4 (valid stride-2
                                                # sites live at odd row/col groups;
                                                # other sites hold unused finite
                                                # values never read by lin1)

    # flatten + linear1 + relu5: gather the 7 valid stride-2 row slabs into one
    # (TB, 896) LHS -> a single K=896 dot (stride-2 column selection and the
    # torch NCHW flatten order are baked into wl1).
    h_lhs = jnp.concatenate(
        [cb_ref[(2 * oy + 1) * TB:(2 * oy + 2) * TB, :] for oy in range(7)],
        axis=1)
    h = jnp.maximum(
        jnp.dot(h_lhs, wl1_ref[...], preferred_element_type=f32)
        + bias_ref[4:5, :], 0.0)

    # linear2 (lane-dense (TB, 128) output; columns >= 10 are zero, sliced off
    # in the wrapper).
    out_ref[...] = jnp.dot(h, wl2_ref[...], preferred_element_type=f32) \
        + bias_ref[5:6, :]


# ------------------------- one-time weight prep ----------------------------- #

def _lane_mask():
    interior = ((jnp.arange(GW) >= 1) & (jnp.arange(GW) <= 14)).astype(jnp.float32)
    return jnp.repeat(interior, C)          # (128,): zero at border col groups 0, 15


def _banded_blocks(w, colmask):
    """w: (Cout, Cin, kh, kw) OIHW -> (kh*128, 128) banded blocks in K-concat order.

    block[di*128 + p*8 + ci, b*8 + co] = w[co, ci, di, dj]  where p = b + dj - 1.
    Border output column groups (b = 0, 15) are zeroed (lane mask folded in)."""
    _, cin, kh, kw = w.shape
    shift = jnp.stack([jnp.eye(GW, k=1 - j, dtype=jnp.float32) for j in range(kw)])
    wt = jnp.transpose(w, (2, 3, 1, 0)).astype(jnp.float32)      # (kh, kw, ci, co)
    blk = jnp.einsum('jpb,djic->dpibc', shift, wt)               # (kh, p, ci, b, co)
    blk = blk.reshape(kh, GW * cin, LANES) * colmask[None, None, :]
    return blk.reshape(kh * GW * cin, LANES)


def _conv1_weight(w1, colmask):
    """w1: (8, 1, 4, 4) -> (128, 128) GEMM weight for the conv1 patch rows.

    W[di*30 + pw, b*8 + co] = w1[co, 0, di, dj]  where pw = 2*b + dj - 2."""
    win = 30
    pw = jnp.arange(win)
    rows = []
    for di in range(4):
        blk = jnp.zeros((win, GW, C), jnp.float32)
        for dj in range(4):
            tgt = 2 * jnp.arange(GW) + dj - 2
            sel = (pw[:, None] == tgt[None, :]).astype(jnp.float32)   # (30, 16)
            blk = blk + sel[:, :, None] * w1[:, 0, di, dj][None, None, :]
        rows.append(blk)
    wmat = jnp.stack(rows).reshape(4 * win, LANES)                    # (120, 128)
    wmat = jnp.pad(wmat, ((0, LANES - 4 * win), (0, 0)))
    return wmat * colmask[None, :]


def _lin1_blocks(wl1):
    """wl1: (100, 392) torch flatten order (co*49 + oy*7 + ox) -> (7*128, 128).

    block[oy*128 + (2*ox+1)*8 + co, j] = wl1[j, co*49 + oy*7 + ox]."""
    w4d = wl1.reshape(100, C, 7, 7)                                   # (j, co, oy, ox)
    blocks = []
    for oy in range(7):
        vals = jnp.transpose(w4d[:, :, oy, :], (2, 1, 0))             # (ox, co, j)
        vals = jnp.pad(vals, ((0, 0), (0, 0), (0, LANES - 100)))
        blk = jnp.zeros((GW, C, LANES), jnp.float32).at[1:14:2].set(vals)
        blocks.append(blk.reshape(LANES, LANES))
    return jnp.stack(blocks).reshape(7 * LANES, LANES)


def _lin2_weight(wl2):
    return jnp.zeros((LANES, LANES), jnp.float32).at[:100, :10].set(wl2.T)


def prepare_weights(params):
    colmask = _lane_mask()
    bias = jnp.zeros((8, LANES), jnp.float32)
    bias = bias.at[0].set(jnp.tile(params["conv1_b"], GW) * colmask)
    bias = bias.at[1].set(jnp.tile(params["conv2_b"], GW) * colmask)
    bias = bias.at[2].set(jnp.tile(params["conv3_b"], GW) * colmask)
    bias = bias.at[3].set(jnp.tile(params["conv4_b"], GW) * colmask)
    bias = bias.at[4, :100].set(params["lin1_b"])
    bias = bias.at[5, :10].set(params["lin2_b"])
    return {
        "w1": _conv1_weight(params["conv1_w"], colmask),
        "w2": _banded_blocks(params["conv2_w"], colmask),
        "w3": _banded_blocks(params["conv3_w"], colmask),
        "w4": _banded_blocks(params["conv4_w"], colmask),
        "wl1": _lin1_blocks(params["lin1_w"]),
        "wl2": _lin2_weight(params["lin2_w"]),
        "bias": bias,
    }


# --------------------------- per-call input glue ---------------------------- #

def _conv1_patches(x):
    """x: (n_pad, 1, 28, 28), n_pad % TB == 0 -> (n_pad//TB * 112, 128) patches.

    Tile-major, interior groups only: row (t*112 + a*TB + i) holds, for image
    t*TB+i and canvas row-group a+1, the 4 padded input rows {2(a+1)+di-3}
    (30 padded cols each), matching _conv1_weight's row layout."""
    n_pad = x.shape[0]
    nt = n_pad // TB
    xp = jnp.pad(x[:, 0], ((0, 0), (3, 3), (1, 1)))                   # (n_pad, 34, 30)
    slabs = [xp[:, 2 + di:29 + di:2, :] for di in range(4)]           # (n_pad, 14, 30)
    p = jnp.stack(slabs, axis=2).reshape(n_pad, 14, 4 * 30)           # (n_pad, 14, 120)
    p = p.reshape(nt, TB, 14, 4 * 30)
    p = jnp.transpose(p, (0, 2, 1, 3)).reshape(nt * INT, 4 * 30)
    return jnp.pad(p, ((0, 0), (0, LANES - 4 * 30)))


# ------------------------------- forward ------------------------------------ #

@jax.jit
def mnist_model_deep_forward(prep, x):
    n = x.shape[0]
    num_tiles = pl.cdiv(n, TB)
    n_pad = num_tiles * TB
    x = x.astype(jnp.float32)
    if n_pad != n:
        x = jnp.pad(x, ((0, n_pad - n), (0, 0), (0, 0), (0, 0)))
    patches = _conv1_patches(x)

    out = pl.pallas_call(
        _fused_kernel,
        out_shape=jax.ShapeDtypeStruct((n_pad, LANES), jnp.float32),
        grid_spec=pltpu.PrefetchScalarGridSpec(
            num_scalar_prefetch=0,
            grid=(num_tiles,),
            in_specs=[
                pl.BlockSpec((INT, LANES), lambda t: (t, 0)),        # conv1 patches
                pl.BlockSpec((LANES, LANES), lambda t: (0, 0)),      # w1
                pl.BlockSpec((3 * LANES, LANES), lambda t: (0, 0)),  # w2 (banded)
                pl.BlockSpec((3 * LANES, LANES), lambda t: (0, 0)),  # w3 (banded)
                pl.BlockSpec((4 * LANES, LANES), lambda t: (0, 0)),  # w4 (banded)
                pl.BlockSpec((7 * LANES, LANES), lambda t: (0, 0)),  # lin1 (K=896)
                pl.BlockSpec((LANES, LANES), lambda t: (0, 0)),      # lin2
                pl.BlockSpec((8, LANES), lambda t: (0, 0)),          # biases
            ],
            out_specs=pl.BlockSpec((TB, LANES), lambda t: (t, 0)),
            scratch_shapes=[
                pltpu.VMEM((CROWS, LANES), jnp.float32),             # canvas A
                pltpu.VMEM((CROWS, LANES), jnp.float32),             # canvas B
            ],
        ),
        compiler_params=pltpu.CompilerParams(
            dimension_semantics=("parallel",),        # v7x: shard tiles over 2 TCs
            vmem_limit_bytes=32 * 1024 * 1024,
        ),
    )(patches, prep["w1"], prep["w2"], prep["w3"], prep["w4"],
      prep["wl1"], prep["wl2"], prep["bias"])
    return out[:n, :10]


# ----------------------------- params / reference --------------------------- #

def init_params(key):
    keys = jax.random.split(key, 12)

    def uinit(k, shape, fan_in):
        bound = 1.0 / float(fan_in) ** 0.5
        return jax.random.uniform(k, shape, jnp.float32, -bound, bound)

    return {
        "conv1_w": uinit(keys[0], (8, 1, 4, 4), 1 * 4 * 4),
        "conv1_b": uinit(keys[1], (8,), 1 * 4 * 4),
        "conv2_w": uinit(keys[2], (8, 8, 3, 3), 8 * 3 * 3),
        "conv2_b": uinit(keys[3], (8,), 8 * 3 * 3),
        "conv3_w": uinit(keys[4], (8, 8, 3, 3), 8 * 3 * 3),
        "conv3_b": uinit(keys[5], (8,), 8 * 3 * 3),
        "conv4_w": uinit(keys[6], (8, 8, 4, 4), 8 * 4 * 4),
        "conv4_b": uinit(keys[7], (8,), 8 * 4 * 4),
        "lin1_w": uinit(keys[8], (100, 8 * 7 * 7), 8 * 7 * 7),
        "lin1_b": uinit(keys[9], (100,), 8 * 7 * 7),
        "lin2_w": uinit(keys[10], (10, 100), 100),
        "lin2_b": uinit(keys[11], (10,), 100),
    }


def reference_forward(params, x):
    """Pure-JAX reference (lax.conv) for correctness checking."""
    def conv(x, w, b, stride, pad):
        y = jax.lax.conv_general_dilated(
            x, w, (stride, stride), [(pad, pad), (pad, pad)],
            dimension_numbers=("NCHW", "OIHW", "NCHW"))
        return y + b.reshape(1, -1, 1, 1)

    out = jax.nn.relu(conv(x, params["conv1_w"], params["conv1_b"], 2, 1))
    out = jax.nn.relu(conv(out, params["conv2_w"], params["conv2_b"], 1, 1))
    out = jax.nn.relu(conv(out, params["conv3_w"], params["conv3_b"], 1, 1))
    out = jax.nn.relu(conv(out, params["conv4_w"], params["conv4_b"], 2, 1))
    flat = out.reshape(out.shape[0], -1)
    h = jax.nn.relu(flat @ params["lin1_w"].T + params["lin1_b"])
    return h @ params["lin2_w"].T + params["lin2_b"]


if __name__ == "__main__":
    key = jax.random.PRNGKey(0)
    pkey, xkey = jax.random.split(key)
    params = init_params(pkey)
    prep = prepare_weights(params)          # one-time weight transform

    # Batch 2 (< TB, padding path) and batch 13 (non-multiple, 2 grid tiles).
    for batch in (2, 13):
        x = jax.random.normal(jax.random.fold_in(xkey, batch),
                              (batch, 1, 28, 28), dtype=jnp.float32)
        logits = jax.block_until_ready(mnist_model_deep_forward(prep, x))
        assert logits.shape == (batch, 10) and logits.dtype == jnp.float32
        ref = jax.block_until_ready(reference_forward(params, x))
        assert jnp.allclose(logits, ref, atol=1e-4, rtol=1e-4), \
            f"mismatch vs reference at batch={batch}"

    print("KERNEL_OK")
</pallas_src>

<mosaic_0001>
module attributes {stable_mosaic.version = 11 : i64} {
  func.func @_fused_kernel(%arg0: i32, %arg1: memref<112x128xf32, #tpu.memory_space<vmem>>, %arg2: memref<128x128xf32, #tpu.memory_space<vmem>>, %arg3: memref<384x128xf32, #tpu.memory_space<vmem>>, %arg4: memref<384x128xf32, #tpu.memory_space<vmem>>, %arg5: memref<512x128xf32, #tpu.memory_space<vmem>>, %arg6: memref<896x128xf32, #tpu.memory_space<vmem>>, %arg7: memref<128x128xf32, #tpu.memory_space<vmem>>, %arg8: memref<8x128xf32, #tpu.memory_space<vmem>>, %arg9: memref<8x128xf32, #tpu.memory_space<vmem>>, %arg10: memref<136x128xf32, #tpu.memory_space<vmem>>, %arg11: memref<136x128xf32, #tpu.memory_space<vmem>>) attributes {dimension_semantics = [#tpu.dimension_semantics<parallel>], iteration_bounds = array<i64: 1>, scalar_prefetch = 0 : i64, scratch_operands = 2 : i64, tpu.core_type = #tpu.core_type<tc>, window_params = [{transform_indices = @transform_0, window_bounds = array<i64: 112, 128>}, {pipeline_mode = #tpu.pipeline_mode<synchronous>, transform_indices = @transform_1, window_bounds = array<i64: 128, 128>}, {pipeline_mode = #tpu.pipeline_mode<synchronous>, transform_indices = @transform_2, window_bounds = array<i64: 384, 128>}, {pipeline_mode = #tpu.pipeline_mode<synchronous>, transform_indices = @transform_3, window_bounds = array<i64: 384, 128>}, {pipeline_mode = #tpu.pipeline_mode<synchronous>, transform_indices = @transform_4, window_bounds = array<i64: 512, 128>}, {pipeline_mode = #tpu.pipeline_mode<synchronous>, transform_indices = @transform_5, window_bounds = array<i64: 896, 128>}, {pipeline_mode = #tpu.pipeline_mode<synchronous>, transform_indices = @transform_6, window_bounds = array<i64: 128, 128>}, {pipeline_mode = #tpu.pipeline_mode<synchronous>, transform_indices = @transform_7, window_bounds = array<i64: 8, 128>}, {transform_indices = @transform_8, window_bounds = array<i64: 8, 128>}]} {
    %cst = arith.constant 0.000000e+00 : f32
    %0 = vector.broadcast %cst : f32 to vector<8x128xf32>
    %c0 = arith.constant 0 : index
    %c0_0 = arith.constant 0 : index
    %1 = vector.load %arg10[%c0, %c0_0] : memref<136x128xf32, #tpu.memory_space<vmem>>, vector<8x128xf32>
    tpu.vector_store %arg10[%c0, %c0_0], %0 {strides = array<i32>} : memref<136x128xf32, #tpu.memory_space<vmem>>, vector<8x128xf32>,
    %cst_1 = arith.constant 0.000000e+00 : f32
    %2 = vector.broadcast %cst_1 : f32 to vector<16x128xf32>
    %c120 = arith.constant 120 : index
    %c0_2 = arith.constant 0 : index
    %3 = vector.load %arg10[%c120, %c0_2] : memref<136x128xf32, #tpu.memory_space<vmem>>, vector<16x128xf32>
    tpu.vector_store %arg10[%c120, %c0_2], %2 {strides = array<i32>} : memref<136x128xf32, #tpu.memory_space<vmem>>, vector<16x128xf32>,
    %cst_3 = arith.constant 0.000000e+00 : f32
    %4 = vector.broadcast %cst_3 : f32 to vector<8x128xf32>
    %c0_4 = arith.constant 0 : index
    %c0_5 = arith.constant 0 : index
    %5 = vector.load %arg11[%c0_4, %c0_5] : memref<136x128xf32, #tpu.memory_space<vmem>>, vector<8x128xf32>
    tpu.vector_store %arg11[%c0_4, %c0_5], %4 {strides = array<i32>} : memref<136x128xf32, #tpu.memory_space<vmem>>, vector<8x128xf32>,
    %cst_6 = arith.constant 0.000000e+00 : f32
    %6 = vector.broadcast %cst_6 : f32 to vector<16x128xf32>
    %c120_7 = arith.constant 120 : index
    %c0_8 = arith.constant 0 : index
    %7 = vector.load %arg11[%c120_7, %c0_8] : memref<136x128xf32, #tpu.memory_space<vmem>>, vector<16x128xf32>
    tpu.vector_store %arg11[%c120_7, %c0_8], %6 {strides = array<i32>} : memref<136x128xf32, #tpu.memory_space<vmem>>, vector<16x128xf32>,
    %c0_9 = arith.constant 0 : index
    %c0_10 = arith.constant 0 : index
    %8 = vector.load %arg1[%c0_9, %c0_10] : memref<112x128xf32, #tpu.memory_space<vmem>>, vector<112x128xf32>
    %c0_11 = arith.constant 0 : index
    %c0_12 = arith.constant 0 : index
    %9 = vector.load %arg2[%c0_11, %c0_12] : memref<128x128xf32, #tpu.memory_space<vmem>>, vector<128x128xf32>
    %cst_13 = arith.constant dense<0.000000e+00> : vector<112x128xf32>
    %10 = tpu.matmul %8, %9, %cst_13 {dimension_numbers = #tpu.dot_dimension_numbers<[1], [0], [0], [1], [0, 0, 1, 1], [], []>} : vector<112x128xf32>, vector<128x128xf32>, vector<112x128xf32> -> vector<112x128xf32>
    %c0_14 = arith.constant 0 : index
    %c0_15 = arith.constant 0 : index
    %11 = vector.load %arg8[%c0_14, %c0_15] : memref<8x128xf32, #tpu.memory_space<vmem>>, vector<1x128xf32>
    %12 = vector.broadcast %11 : vector<1x128xf32> to vector<112x128xf32>
    %13 = arith.addf %10, %12 : vector<112x128xf32>
    %cst_16 = arith.constant 0.000000e+00 : f32
    %14 = vector.broadcast %cst_16 : f32 to vector<112x128xf32>
    %15 = arith.maximumf %13, %14 : vector<112x128xf32>
    %c8 = arith.constant 8 : index
    %c0_17 = arith.constant 0 : index
    %16 = vector.load %arg10[%c8, %c0_17] : memref<136x128xf32, #tpu.memory_space<vmem>>, vector<112x128xf32>
    tpu.vector_store %arg10[%c8, %c0_17], %15 {strides = array<i32>} : memref<136x128xf32, #tpu.memory_space<vmem>>, vector<112x128xf32>,
    %c1 = arith.constant 1 : index
    %c0_18 = arith.constant 0 : index
    %17 = vector.load %arg8[%c1, %c0_18] : memref<8x128xf32, #tpu.memory_space<vmem>>, vector<1x128xf32>
    %c0_19 = arith.constant 0 : index
    %c0_20 = arith.constant 0 : index
    %18 = vector.load %arg10[%c0_19, %c0_20] : memref<136x128xf32, #tpu.memory_space<vmem>>, vector<56x128xf32>
    %c8_21 = arith.constant 8 : index
    %c0_22 = arith.constant 0 : index
    %19 = vector.load %arg10[%c8_21, %c0_22] : memref<136x128xf32, #tpu.memory_space<vmem>>, vector<56x128xf32>
    %c16 = arith.constant 16 : index
    %c0_23 = arith.constant 0 : index
    %20 = vector.load %arg10[%c16, %c0_23] : memref<136x128xf32, #tpu.memory_space<vmem>>, vector<56x128xf32>
    %21 = tpu.concatenate %18, %19, %20 in 1 : vector<56x128xf32>, vector<56x128xf32>, vector<56x128xf32> -> vector<56x384xf32>
    %c0_24 = arith.constant 0 : index
    %c0_25 = arith.constant 0 : index
    %22 = vector.load %arg3[%c0_24, %c0_25] : memref<384x128xf32, #tpu.memory_space<vmem>>, vector<384x128xf32>
    %cst_26 = arith.constant dense<0.000000e+00> : vector<56x128xf32>
    %23 = tpu.matmul %21, %22, %cst_26 {dimension_numbers = #tpu.dot_dimension_numbers<[1], [0], [0], [1], [0, 0, 1, 1], [], []>} : vector<56x384xf32>, vector<384x128xf32>, vector<56x128xf32> -> vector<56x128xf32>
    %24 = vector.broadcast %17 : vector<1x128xf32> to vector<56x128xf32>
    %25 = arith.addf %23, %24 : vector<56x128xf32>
    %cst_27 = arith.constant 0.000000e+00 : f32
    %26 = vector.broadcast %cst_27 : f32 to vector<56x128xf32>
    %27 = arith.maximumf %25, %26 : vector<56x128xf32>
    %c8_28 = arith.constant 8 : index
    %c0_29 = arith.constant 0 : index
    %28 = vector.load %arg11[%c8_28, %c0_29] : memref<136x128xf32, #tpu.memory_space<vmem>>, vector<56x128xf32>
    tpu.vector_store %arg11[%c8_28, %c0_29], %27 {strides = array<i32>} : memref<136x128xf32, #tpu.memory_space<vmem>>, vector<56x128xf32>,
    %c56 = arith.constant 56 : index
    %c0_30 = arith.constant 0 : index
    %29 = vector.load %arg10[%c56, %c0_30] : memref<136x128xf32, #tpu.memory_space<vmem>>, vector<56x128xf32>
    %c64 = arith.constant 64 : index
    %c0_31 = arith.constant 0 : index
    %30 = vector.load %arg10[%c64, %c0_31] : memref<136x128xf32, #tpu.memory_space<vmem>>, vector<56x128xf32>
    %c72 = arith.constant 72 : index
    %c0_32 = arith.constant 0 : index
    %31 = vector.load %arg10[%c72, %c0_32] : memref<136x128xf32, #tpu.memory_space<vmem>>, vector<56x128xf32>
    %32 = tpu.concatenate %29, %30, %31 in 1 : vector<56x128xf32>, vector<56x128xf32>, vector<56x128xf32> -> vector<56x384xf32>
    %c0_33 = arith.constant 0 : index
    %c0_34 = arith.constant 0 : index
    %33 = vector.load %arg3[%c0_33, %c0_34] : memref<384x128xf32, #tpu.memory_space<vmem>>, vector<384x128xf32>
    %cst_35 = arith.constant dense<0.000000e+00> : vector<56x128xf32>
    %34 = tpu.matmul %32, %33, %cst_35 {dimension_numbers = #tpu.dot_dimension_numbers<[1], [0], [0], [1], [0, 0, 1, 1], [], []>} : vector<56x384xf32>, vector<384x128xf32>, vector<56x128xf32> -> vector<56x128xf32>
    %35 = vector.broadcast %17 : vector<1x128xf32> to vector<56x128xf32>
    %36 = arith.addf %34, %35 : vector<56x128xf32>
    %cst_36 = arith.constant 0.000000e+00 : f32
    %37 = vector.broadcast %cst_36 : f32 to vector<56x128xf32>
    %38 = arith.maximumf %36, %37 : vector<56x128xf32>
    %c64_37 = arith.constant 64 : index
    %c0_38 = arith.constant 0 : index
    %39 = vector.load %arg11[%c64_37, %c0_38] : memref<136x128xf32, #tpu.memory_space<vmem>>, vector<56x128xf32>
    tpu.vector_store %arg11[%c64_37, %c0_38], %38 {strides = array<i32>} : memref<136x128xf32, #tpu.memory_space<vmem>>, vector<56x128xf32>,
    %c2 = arith.constant 2 : index
    %c0_39 = arith.constant 0 : index
    %40 = vector.load %arg8[%c2, %c0_39] : memref<8x128xf32, #tpu.memory_space<vmem>>, vector<1x128xf32>
    %c0_40 = arith.constant 0 : index
    %c0_41 = arith.constant 0 : index
    %41 = vector.load %arg11[%c0_40, %c0_41] : memref<136x128xf32, #tpu.memory_space<vmem>>, vector<56x128xf32>
    %c8_42 = arith.constant 8 : index
    %c0_43 = arith.constant 0 : index
    %42 = vector.load %arg11[%c8_42, %c0_43] : memref<136x128xf32, #tpu.memory_space<vmem>>, vector<56x128xf32>
    %c16_44 = arith.constant 16 : index
    %c0_45 = arith.constant 0 : index
    %43 = vector.load %arg11[%c16_44, %c0_45] : memref<136x128xf32, #tpu.memory_space<vmem>>, vector<56x128xf32>
    %44 = tpu.concatenate %41, %42, %43 in 1 : vector<56x128xf32>, vector<56x128xf32>, vector<56x128xf32> -> vector<56x384xf32>
    %c0_46 = arith.constant 0 : index
    %c0_47 = arith.constant 0 : index
    %45 = vector.load %arg4[%c0_46, %c0_47] : memref<384x128xf32, #tpu.memory_space<vmem>>, vector<384x128xf32>
    %cst_48 = arith.constant dense<0.000000e+00> : vector<56x128xf32>
    %46 = tpu.matmul %44, %45, %cst_48 {dimension_numbers = #tpu.dot_dimension_numbers<[1], [0], [0], [1], [0, 0, 1, 1], [], []>} : vector<56x384xf32>, vector<384x128xf32>, vector<56x128xf32> -> vector<56x128xf32>
    %47 = vector.broadcast %40 : vector<1x128xf32> to vector<56x128xf32>
    %48 = arith.addf %46, %47 : vector<56x128xf32>
    %cst_49 = arith.constant 0.000000e+00 : f32
    %49 = vector.broadcast %cst_49 : f32 to vector<56x128xf32>
    %50 = arith.maximumf %48, %49 : vector<56x128xf32>
    %c8_50 = arith.constant 8 : index
    %c0_51 = arith.constant 0 : index
    %51 = vector.load %arg10[%c8_50, %c0_51] : memref<136x128xf32, #tpu.memory_space<vmem>>, vector<56x128xf32>
    tpu.vector_store %arg10[%c8_50, %c0_51], %50 {strides = array<i32>} : memref<136x128xf32, #tpu.memory_space<vmem>>, vector<56x128xf32>,
    %c56_52 = arith.constant 56 : index
    %c0_53 = arith.constant 0 : index
    %52 = vector.load %arg11[%c56_52, %c0_53] : memref<136x128xf32, #tpu.memory_space<vmem>>, vector<56x128xf32>
    %c64_54 = arith.constant 64 : index
    %c0_55 = arith.constant 0 : index
    %53 = vector.load %arg11[%c64_54, %c0_55] : memref<136x128xf32, #tpu.memory_space<vmem>>, vector<56x128xf32>
    %c72_56 = arith.constant 72 : index
    %c0_57 = arith.constant 0 : index
    %54 = vector.load %arg11[%c72_56, %c0_57] : memref<136x128xf32, #tpu.memory_space<vmem>>, vector<56x128xf32>
    %55 = tpu.concatenate %52, %53, %54 in 1 : vector<56x128xf32>, vector<56x128xf32>, vector<56x128xf32> -> vector<56x384xf32>
    %c0_58 = arith.constant 0 : index
    %c0_59 = arith.constant 0 : index
    %56 = vector.load %arg4[%c0_58, %c0_59] : memref<384x128xf32, #tpu.memory_space<vmem>>, vector<384x128xf32>
    %cst_60 = arith.constant dense<0.000000e+00> : vector<56x128xf32>
    %57 = tpu.matmul %55, %56, %cst_60 {dimension_numbers = #tpu.dot_dimension_numbers<[1], [0], [0], [1], [0, 0, 1, 1], [], []>} : vector<56x384xf32>, vector<384x128xf32>, vector<56x128xf32> -> vector<56x128xf32>
    %58 = vector.broadcast %40 : vector<1x128xf32> to vector<56x128xf32>
    %59 = arith.addf %57, %58 : vector<56x128xf32>
    %cst_61 = arith.constant 0.000000e+00 : f32
    %60 = vector.broadcast %cst_61 : f32 to vector<56x128xf32>
    %61 = arith.maximumf %59, %60 : vector<56x128xf32>
    %c64_62 = arith.constant 64 : index
    %c0_63 = arith.constant 0 : index
    %62 = vector.load %arg10[%c64_62, %c0_63] : memref<136x128xf32, #tpu.memory_space<vmem>>, vector<56x128xf32>
    tpu.vector_store %arg10[%c64_62, %c0_63], %61 {strides = array<i32>} : memref<136x128xf32, #tpu.memory_space<vmem>>, vector<56x128xf32>,
    %c3 = arith.constant 3 : index
    %c0_64 = arith.constant 0 : index
    %63 = vector.load %arg8[%c3, %c0_64] : memref<8x128xf32, #tpu.memory_space<vmem>>, vector<1x128xf32>
    %c0_65 = arith.constant 0 : index
    %c0_66 = arith.constant 0 : index
    %64 = vector.load %arg10[%c0_65, %c0_66] : memref<136x128xf32, #tpu.memory_space<vmem>>, vector<56x128xf32>
    %c8_67 = arith.constant 8 : index
    %c0_68 = arith.constant 0 : index
    %65 = vector.load %arg10[%c8_67, %c0_68] : memref<136x128xf32, #tpu.memory_space<vmem>>, vector<56x128xf32>
    %c16_69 = arith.constant 16 : index
    %c0_70 = arith.constant 0 : index
    %66 = vector.load %arg10[%c16_69, %c0_70] : memref<136x128xf32, #tpu.memory_space<vmem>>, vector<56x128xf32>
    %c24 = arith.constant 24 : index
    %c0_71 = arith.constant 0 : index
    %67 = vector.load %arg10[%c24, %c0_71] : memref<136x128xf32, #tpu.memory_space<vmem>>, vector<56x128xf32>
    %68 = tpu.concatenate %64, %65, %66, %67 in 1 : vector<56x128xf32>, vector<56x128xf32>, vector<56x128xf32>, vector<56x128xf32> -> vector<56x512xf32>
    %c0_72 = arith.constant 0 : index
    %c0_73 = arith.constant 0 : index
    %69 = vector.load %arg5[%c0_72, %c0_73] : memref<512x128xf32, #tpu.memory_space<vmem>>, vector<512x128xf32>
    %cst_74 = arith.constant dense<0.000000e+00> : vector<56x128xf32>
    %70 = tpu.matmul %68, %69, %cst_74 {dimension_numbers = #tpu.dot_dimension_numbers<[1], [0], [0], [1], [0, 0, 1, 1], [], []>} : vector<56x512xf32>, vector<512x128xf32>, vector<56x128xf32> -> vector<56x128xf32>
    %71 = vector.broadcast %63 : vector<1x128xf32> to vector<56x128xf32>
    %72 = arith.addf %70, %71 : vector<56x128xf32>
    %cst_75 = arith.constant 0.000000e+00 : f32
    %73 = vector.broadcast %cst_75 : f32 to vector<56x128xf32>
    %74 = arith.maximumf %72, %73 : vector<56x128xf32>
    %c8_76 = arith.constant 8 : index
    %c0_77 = arith.constant 0 : index
    %75 = vector.load %arg11[%c8_76, %c0_77] : memref<136x128xf32, #tpu.memory_space<vmem>>, vector<56x128xf32>
    tpu.vector_store %arg11[%c8_76, %c0_77], %74 {strides = array<i32>} : memref<136x128xf32, #tpu.memory_space<vmem>>, vector<56x128xf32>,
    %c56_78 = arith.constant 56 : index
    %c0_79 = arith.constant 0 : index
    %76 = vector.load %arg10[%c56_78, %c0_79] : memref<136x128xf32, #tpu.memory_space<vmem>>, vector<56x128xf32>
    %c64_80 = arith.constant 64 : index
    %c0_81 = arith.constant 0 : index
    %77 = vector.load %arg10[%c64_80, %c0_81] : memref<136x128xf32, #tpu.memory_space<vmem>>, vector<56x128xf32>
    %c72_82 = arith.constant 72 : index
    %c0_83 = arith.constant 0 : index
    %78 = vector.load %arg10[%c72_82, %c0_83] : memref<136x128xf32, #tpu.memory_space<vmem>>, vector<56x128xf32>
    %c80 = arith.constant 80 : index
    %c0_84 = arith.constant 0 : index
    %79 = vector.load %arg10[%c80, %c0_84] : memref<136x128xf32, #tpu.memory_space<vmem>>, vector<56x128xf32>
    %80 = tpu.concatenate %76, %77, %78, %79 in 1 : vector<56x128xf32>, vector<56x128xf32>, vector<56x128xf32>, vector<56x128xf32> -> vector<56x512xf32>
    %c0_85 = arith.constant 0 : index
    %c0_86 = arith.constant 0 : index
    %81 = vector.load %arg5[%c0_85, %c0_86] : memref<512x128xf32, #tpu.memory_space<vmem>>, vector<512x128xf32>
    %cst_87 = arith.constant dense<0.000000e+00> : vector<56x128xf32>
    %82 = tpu.matmul %80, %81, %cst_87 {dimension_numbers = #tpu.dot_dimension_numbers<[1], [0], [0], [1], [0, 0, 1, 1], [], []>} : vector<56x512xf32>, vector<512x128xf32>, vector<56x128xf32> -> vector<56x128xf32>
    %83 = vector.broadcast %63 : vector<1x128xf32> to vector<56x128xf32>
    %84 = arith.addf %82, %83 : vector<56x128xf32>
    %cst_88 = arith.constant 0.000000e+00 : f32
    %85 = vector.broadcast %cst_88 : f32 to vector<56x128xf32>
    %86 = arith.maximumf %84, %85 : vector<56x128xf32>
    %c64_89 = arith.constant 64 : index
    %c0_90 = arith.constant 0 : index
    %87 = vector.load %arg11[%c64_89, %c0_90] : memref<136x128xf32, #tpu.memory_space<vmem>>, vector<56x128xf32>
    tpu.vector_store %arg11[%c64_89, %c0_90], %86 {strides = array<i32>} : memref<136x128xf32, #tpu.memory_space<vmem>>, vector<56x128xf32>,
    %c8_91 = arith.constant 8 : index
    %c0_92 = arith.constant 0 : index
    %88 = vector.load %arg11[%c8_91, %c0_92] : memref<136x128xf32, #tpu.memory_space<vmem>>, vector<8x128xf32>
    %c24_93 = arith.constant 24 : index
    %c0_94 = arith.constant 0 : index
    %89 = vector.load %arg11[%c24_93, %c0_94] : memref<136x128xf32, #tpu.memory_space<vmem>>, vector<8x128xf32>
    %c40 = arith.constant 40 : index
    %c0_95 = arith.constant 0 : index
    %90 = vector.load %arg11[%c40, %c0_95] : memref<136x128xf32, #tpu.memory_space<vmem>>, vector<8x128xf32>
    %c56_96 = arith.constant 56 : index
    %c0_97 = arith.constant 0 : index
    %91 = vector.load %arg11[%c56_96, %c0_97] : memref<136x128xf32, #tpu.memory_space<vmem>>, vector<8x128xf32>
    %c72_98 = arith.constant 72 : index
    %c0_99 = arith.constant 0 : index
    %92 = vector.load %arg11[%c72_98, %c0_99] : memref<136x128xf32, #tpu.memory_space<vmem>>, vector<8x128xf32>
    %c88 = arith.constant 88 : index
    %c0_100 = arith.constant 0 : index
    %93 = vector.load %arg11[%c88, %c0_100] : memref<136x128xf32, #tpu.memory_space<vmem>>, vector<8x128xf32>
    %c104 = arith.constant 104 : index
    %c0_101 = arith.constant 0 : index
    %94 = vector.load %arg11[%c104, %c0_101] : memref<136x128xf32, #tpu.memory_space<vmem>>, vector<8x128xf32>
    %95 = tpu.concatenate %88, %89, %90, %91, %92, %93, %94 in 1 : vector<8x128xf32>, vector<8x128xf32>, vector<8x128xf32>, vector<8x128xf32>, vector<8x128xf32>, vector<8x128xf32>, vector<8x128xf32> -> vector<8x896xf32>
    %c0_102 = arith.constant 0 : index
    %c0_103 = arith.constant 0 : index
    %96 = vector.load %arg6[%c0_102, %c0_103] : memref<896x128xf32, #tpu.memory_space<vmem>>, vector<896x128xf32>
    %cst_104 = arith.constant dense<0.000000e+00> : vector<8x128xf32>
    %97 = tpu.matmul %95, %96, %cst_104 {dimension_numbers = #tpu.dot_dimension_numbers<[1], [0], [0], [1], [0, 0, 1, 1], [], []>} : vector<8x896xf32>, vector<896x128xf32>, vector<8x128xf32> -> vector<8x128xf32>
    %c4 = arith.constant 4 : index
    %c0_105 = arith.constant 0 : index
    %98 = vector.load %arg8[%c4, %c0_105] : memref<8x128xf32, #tpu.memory_space<vmem>>, vector<1x128xf32>
    %99 = vector.broadcast %98 : vector<1x128xf32> to vector<8x128xf32>
    %100 = arith.addf %97, %99 : vector<8x128xf32>
    %cst_106 = arith.constant 0.000000e+00 : f32
    %101 = vector.broadcast %cst_106 : f32 to vector<8x128xf32>
    %102 = arith.maximumf %100, %101 : vector<8x128xf32>
    %c0_107 = arith.constant 0 : index
    %c0_108 = arith.constant 0 : index
    %103 = vector.load %arg7[%c0_107, %c0_108] : memref<128x128xf32, #tpu.memory_space<vmem>>, vector<128x128xf32>
    %cst_109 = arith.constant dense<0.000000e+00> : vector<8x128xf32>
    %104 = tpu.matmul %102, %103, %cst_109 {dimension_numbers = #tpu.dot_dimension_numbers<[1], [0], [0], [1], [0, 0, 1, 1], [], []>} : vector<8x128xf32>, vector<128x128xf32>, vector<8x128xf32> -> vector<8x128xf32>
    %c5 = arith.constant 5 : index
    %c0_110 = arith.constant 0 : index
    %105 = vector.load %arg8[%c5, %c0_110] : memref<8x128xf32, #tpu.memory_space<vmem>>, vector<1x128xf32>
    %106 = vector.broadcast %105 : vector<1x128xf32> to vector<8x128xf32>
    %107 = arith.addf %104, %106 : vector<8x128xf32>
    %c0_111 = arith.constant 0 : index
    %c0_112 = arith.constant 0 : index
    %108 = vector.load %arg9[%c0_111, %c0_112] : memref<8x128xf32, #tpu.memory_space<vmem>>, vector<8x128xf32>
    tpu.vector_store %arg9[%c0_111, %c0_112], %107 {strides = array<i32>} : memref<8x128xf32, #tpu.memory_space<vmem>>, vector<8x128xf32>,
    return
  }
  func.func @transform_0(%arg0: i32) -> (i32, i32) {
    %c0_i32 = arith.constant 0 : i32
    %c0_i32_0 = arith.constant 0 : i32
    return %arg0, %c0_i32 : i32, i32
  }
  func.func @transform_1(%arg0: i32) -> (i32, i32) {
    %c0_i32 = arith.constant 0 : i32
    %c0_i32_0 = arith.constant 0 : i32
    %c0_i32_1 = arith.constant 0 : i32
    return %c0_i32, %c0_i32_0 : i32, i32
  }
  func.func @transform_2(%arg0: i32) -> (i32, i32) {
    %c0_i32 = arith.constant 0 : i32
    %c0_i32_0 = arith.constant 0 : i32
    %c0_i32_1 = arith.constant 0 : i32
    return %c0_i32, %c0_i32_0 : i32, i32
  }
  func.func @transform_3(%arg0: i32) -> (i32, i32) {
    %c0_i32 = arith.constant 0 : i32
    %c0_i32_0 = arith.constant 0 : i32
    %c0_i32_1 = arith.constant 0 : i32
    return %c0_i32, %c0_i32_0 : i32, i32
  }
  func.func @transform_4(%arg0: i32) -> (i32, i32) {
    %c0_i32 = arith.constant 0 : i32
    %c0_i32_0 = arith.constant 0 : i32
    %c0_i32_1 = arith.constant 0 : i32
    return %c0_i32, %c0_i32_0 : i32, i32
  }
  func.func @transform_5(%arg0: i32) -> (i32, i32) {
    %c0_i32 = arith.constant 0 : i32
    %c0_i32_0 = arith.constant 0 : i32
    %c0_i32_1 = arith.constant 0 : i32
    return %c0_i32, %c0_i32_0 : i32, i32
  }
  func.func @transform_6(%arg0: i32) -> (i32, i32) {
    %c0_i32 = arith.constant 0 : i32
    %c0_i32_0 = arith.constant 0 : i32
    %c0_i32_1 = arith.constant 0 : i32
    return %c0_i32, %c0_i32_0 : i32, i32
  }
  func.func @transform_7(%arg0: i32) -> (i32, i32) {
    %c0_i32 = arith.constant 0 : i32
    %c0_i32_0 = arith.constant 0 : i32
    %c0_i32_1 = arith.constant 0 : i32
    return %c0_i32, %c0_i32_0 : i32, i32
  }
  func.func @transform_8(%arg0: i32) -> (i32, i32) {
    %c0_i32 = arith.constant 0 : i32
    %c0_i32_0 = arith.constant 0 : i32
    return %arg0, %c0_i32 : i32, i32
  }
}

</mosaic_0001>

<bundles_post_ra>
// kernel: mnist_model_deep_forward.1
= control target key start
LH: loop header
LB: loop body
LE: loop exit
PB: predicated region body
PF: predicated region fallthrough
CT: control target
= control target key end

     0   :  { %vm3973_vm0 = vmmov 0   ;;  %s5507_s1 = inlined_call_operand.vmem [shape: f32[128,128], index: 1, kind: input, shape index: {}]   ;;  %s5508_s0 = inlined_call_operand.vmem [shape: f32[112,128], index: 0, kind: input, shape index: {}]   ;;  %s5509_s2 = inlined_call_operand.vmem [shape: f32[384,128], index: 2, kind: input, shape index: {}]   ;;  %s5510_s7 = inlined_call_operand.vmem [shape: f32[8,128], index: 7, kind: input, shape index: {}]   ;;  %s5511_s3 = inlined_call_operand.vmem [shape: f32[384,128], index: 3, kind: input, shape index: {}]   ;;  %s5512_s4 = inlined_call_operand.vmem [shape: f32[512,128], index: 4, kind: input, shape index: {}]   ;;  %s5513_s5 = inlined_call_operand.vmem [shape: f32[896,128], index: 5, kind: input, shape index: {}]   ;;  %s5514_s6 = inlined_call_operand.vmem [shape: f32[128,128], index: 6, kind: input, shape index: {}]   ;;  %s5515_s8 = inlined_call_operand.vmem [shape: f32[8,128], index: 8, kind: output, shape index: {}]  }
   0x1   :  { %v49_v0 = vld [vmem:[%s5507_s1] sm:$0xff]  ;;  %v50_v1 = vld [vmem:[%s5507_s1 + $0x8] sm:$0xff]  ;;  %v51_v2 = vld [vmem:[%s5507_s1 + $0x10] sm:$0xff] }
   0x2   :  { %v3441_v3 = vpack.c.bf16 %v50_v1, %v49_v0  ;;  %v52_v4 = vld [vmem:[%s5507_s1 + $0x18] sm:$0xff]  ;;  %v53_v6 = vld [vmem:[%s5507_s1 + $0x20] sm:$0xff]  ;;  %v54_v7 = vld [vmem:[%s5507_s1 + $0x28] sm:$0xff] }
   0x3   :  { %v3445_v5 = vpack.c.bf16 %v52_v4, %v51_v2  ;;  %v3449_v8 = vpack.c.bf16 %v54_v7, %v53_v6  ;;  %v35_v9 = vld [vmem:[%s5508_s0] sm:$0xff]  ;;  %v55_v10 = vld [vmem:[%s5507_s1 + $0x30] sm:$0xff]  ;;  %v56_v11 = vld [vmem:[%s5507_s1 + $0x38] sm:$0xff]  ;;  %v3972_v6 = vmov 0.0|0.0  }
   0x4   :  { %3442 = vmatprep.subr.bf16.mxu0 %v3441_v3  ;;  %3138 = vmatprep.mubr.f32.mxu0 %v35_v9  ;;  %v3453_v12 = vpack.c.bf16 %v56_v11, %v55_v10  ;;  %v57_v13 = vld [vmem:[%s5507_s1 + $0x40] sm:$0xff]  ;;  %v58_v14 = vld [vmem:[%s5507_s1 + $0x48] sm:$0xff]  ;;  %v261_v21 = vld [vmem:[%s5509_s2 + $0x90] sm:$0xff] }
   0x5   :  { %3444 = vmatpush3.bf16.msra.mxu0 %v3441_v3  ;;  %v259_v15 = vld [vmem:[%s5509_s2 + $0x80] sm:$0xff]  ;;  %v260_v16 = vld [vmem:[%s5509_s2 + $0x88] sm:$0xff]  ;;  %v3457_v22 = vpack.c.bf16 %v58_v14, %v57_v13  ;;  %v262_v23 = vld [vmem:[%s5509_s2 + $0x98] sm:$0xff] }
   0x6   :  { %3446 = vmatprep.subr.bf16.mxu0 %v3445_v5  ;;  %v243_v17 = vld [vmem:[%s5509_s2] sm:$0xff]  ;;  %v244_v18 = vld [vmem:[%s5509_s2 + $0x8] sm:$0xff]  ;;  %v4065_v19 = vpack.c.bf16 %v260_v16, %v259_v15  ;;  %v245_v24 = vld [vmem:[%s5509_s2 + $0x10] sm:$0xff]  ;;  %v4088_v28 = vpack.c.bf16 %v262_v23, %v261_v21 }
   0x7   :  { %v4067_v20 = vpack.c.bf16 %v244_v18, %v243_v17  ;;  %v246_v25 = vld [vmem:[%s5509_s2 + $0x18] sm:$0xff]  ;;  %v59_v26 = vld [vmem:[%s5507_s1 + $0x50] sm:$0xff]  ;;  %v263_v29 = vld [vmem:[%s5509_s2 + $0xa0] sm:$0xff] }
   0x8   :  { %v60_v27 = vld [vmem:[%s5507_s1 + $0x58] sm:$0xff]  ;;  %3474 = vmatprep.subr.bf16.mxu1 %v4065_v19  ;;  %v4094_v30 = vpack.c.bf16 %v246_v25, %v245_v24  ;;  %v264_v31 = vld [vmem:[%s5509_s2 + $0xa8] sm:$0xff]  ;;  %v247_v33 = vld [vmem:[%s5509_s2 + $0x20] sm:$0xff] }
   0x9   :  { %3448 = vmatpush3.bf16.msra.mxu0 %v3445_v5  ;;  %3476 = vmatpush3.bf16.msra.mxu1 %v4067_v20  ;;  %v4100_v32 = vpack.c.bf16 %v264_v31, %v263_v29  ;;  %v248_v34 = vld [vmem:[%s5509_s2 + $0x28] sm:$0xff]  ;;  %v3461_v35 = vpack.c.bf16 %v60_v27, %v59_v26  ;;  %v265_v36 = vld [vmem:[%s5509_s2 + $0xb0] sm:$0xff]  ;;  %v266_v37 = vld [vmem:[%s5509_s2 + $0xb8] sm:$0xff] }
   0xa   :  { %3450 = vmatprep.subr.bf16.mxu0 %v3449_v8  ;;  %3478 = vmatprep.subr.bf16.mxu1 %v4088_v28  ;;  %v61_v38 = vld [vmem:[%s5507_s1 + $0x60] sm:$0xff]  ;;  %v62_v39 = vld [vmem:[%s5507_s1 + $0x68] sm:$0xff]  ;;  %v4121_v40 = vpack.c.bf16 %v248_v34, %v247_v33  ;;  %v4124_v41 = vpack.c.bf16 %v266_v37, %v265_v36  ;;  %v249_v42 = vld [vmem:[%s5509_s2 + $0x30] sm:$0xff] }
   0xb   :  { %v250_v43 = vld [vmem:[%s5509_s2 + $0x38] sm:$0xff]  ;;  %v3465_v44 = vpack.c.bf16 %v62_v39, %v61_v38  ;;  %v267_v45 = vld [vmem:[%s5509_s2 + $0xc0] sm:$0xff]  ;;  %v268_v46 = vld [vmem:[%s5509_s2 + $0xc8] sm:$0xff] }
   0xc   :  { %v63_v47 = vld [vmem:[%s5507_s1 + $0x70] sm:$0xff]  ;;  %v64_v48 = vld [vmem:[%s5507_s1 + $0x78] sm:$0xff]  ;;  %v4145_v49 = vpack.c.bf16 %v250_v43, %v249_v42  ;;  %v4148_v50 = vpack.c.bf16 %v268_v46, %v267_v45  ;;  %v251_v51 = vld [vmem:[%s5509_s2 + $0x40] sm:$0xff] }
   0xd   :  { %3452 = vmatpush3.bf16.msra.mxu0 %v3449_v8  ;;  %3480 = vmatpush3.bf16.msra.mxu1 %v4094_v30  ;;  %v252_v52 = vld [vmem:[%s5509_s2 + $0x48] sm:$0xff]  ;;  %v3469_v53 = vpack.c.bf16 %v64_v48, %v63_v47  ;;  %v269_v54 = vld [vmem:[%s5509_s2 + $0xd0] sm:$0xff]  ;;  %v270_v55 = vld [vmem:[%s5509_s2 + $0xd8] sm:$0xff] }
   0xe   :  { %3454 = vmatprep.subr.bf16.mxu0 %v3453_v12  ;;  %3482 = vmatprep.subr.bf16.mxu1 %v4100_v32  ;;  %v4163_v56 = vpack.c.bf16 %v252_v52, %v251_v51  ;;  %v4166_v57 = vpack.c.bf16 %v270_v55, %v269_v54  ;;  %v253_v58 = vld [vmem:[%s5509_s2 + $0x50] sm:$0xff]  ;;  %v254_v59 = vld [vmem:[%s5509_s2 + $0x58] sm:$0xff]  ;;  %v275_v60 = vld [vmem:[%s5509_s2 + $0x100] sm:$0xff] }
   0xf   :  { %v276_v61 = vld [vmem:[%s5509_s2 + $0x108] sm:$0xff]  ;;  %v271_v62 = vld [vmem:[%s5509_s2 + $0xe0] sm:$0xff]  ;;  %v4187_v0 = vpack.c.bf16 %v254_v59, %v253_v58  ;;  %v37_v5 = vld [vmem:[%s5508_s0 + $0x10] sm:$0xff]  ;;  %v3974_v58 = vmov 0.0  }
  0x10   :  { %v272_v63 = vld [vmem:[%s5509_s2 + $0xe8] sm:$0xff]  ;;  %v4192_v2 = vpack.c.bf16 %v276_v61, %v275_v60  ;;  %v255_v3 = vld [vmem:[%s5509_s2 + $0x60] sm:$0xff]  ;;  %v277_v7 = vld [vmem:[%s5509_s2 + $0x110] sm:$0xff] }
  0x11   :  { %3456 = vmatpush3.bf16.msra.mxu0 %v3453_v12  ;;  %3484 = vmatpush3.bf16.msra.mxu1 %v4121_v40  ;;  %v36_v1 = vld [vmem:[%s5508_s0 + $0x8] sm:$0xff]  ;;  %v278_v8 = vld [vmem:[%s5509_s2 + $0x118] sm:$0xff]  ;;  %v4211_v9 = vpack.c.bf16 %v272_v63, %v271_v62  ;;  %v39_v13 = vld [vmem:[%s5508_s0 + $0x20] sm:$0xff] }
  0x12   :  { %3458 = vmatprep.subr.bf16.mxu0 %v3457_v22  ;;  %3486 = vmatprep.subr.bf16.mxu1 %v4124_v41  ;;  %v256_v4 = vld [vmem:[%s5509_s2 + $0x68] sm:$0xff]  ;;  %v38_v11 = vld [vmem:[%s5508_s0 + $0x18] sm:$0xff]  ;;  %v4220_v12 = vpack.c.bf16 %v278_v8, %v277_v7  ;;  %v279_v14 = vld [vmem:[%s5509_s2 + $0x120] sm:$0xff] }
  0x13   :  { %v4214_v10 = vpack.c.bf16 %v256_v4, %v255_v3  ;;  %v280_v15 = vld [vmem:[%s5509_s2 + $0x128] sm:$0xff]  ;;  %v41_v18 = vld [vmem:[%s5508_s0 + $0x30] sm:$0xff]  ;;  %v42_v23 = vld [vmem:[%s5508_s0 + $0x38] sm:$0xff] }
  0x14   :  { %v40_v16 = vld [vmem:[%s5508_s0 + $0x28] sm:$0xff]  ;;  %v4238_v17 = vpack.c.bf16 %v280_v15, %v279_v14  ;;  %v281_v21 = vld [vmem:[%s5509_s2 + $0x130] sm:$0xff]  ;;  %v43_v25 = vld [vmem:[%s5508_s0 + $0x40] sm:$0xff] }
  0x15   :  { %3460 = vmatpush3.bf16.msra.mxu0 %v3457_v22  ;;  %3488 = vmatpush3.bf16.msra.mxu1 %v4145_v49  ;;  %v282_v22 = vld [vmem:[%s5509_s2 + $0x138] sm:$0xff]  ;;  %v283_v26 = vld [vmem:[%s5509_s2 + $0x140] sm:$0xff]  ;;  %v284_v27 = vld [vmem:[%s5509_s2 + $0x148] sm:$0xff] }
  0x16   :  { %3462 = vmatprep.subr.bf16.mxu0 %v3461_v35  ;;  %3490 = vmatprep.subr.bf16.mxu1 %v4148_v50  ;;  %v4254_v24 = vpack.c.bf16 %v282_v22, %v281_v21  ;;  %v44_v29 = vld [vmem:[%s5508_s0 + $0x48] sm:$0xff]  ;;  %v4270_v31 = vpack.c.bf16 %v284_v27, %v283_v26  ;;  %v45_v33 = vld [vmem:[%s5508_s0 + $0x50] sm:$0xff]  ;;  %v46_v36 = vld [vmem:[%s5508_s0 + $0x58] sm:$0xff] }
  0x17   :  { %v285_v34 = vld [vmem:[%s5509_s2 + $0x150] sm:$0xff]  ;;  %v47_v38 = vld [vmem:[%s5508_s0 + $0x60] sm:$0xff]  ;;  %v288_v42 = vld [vmem:[%s5509_s2 + $0x168] sm:$0xff] }
  0x18   :  { %v287_v39 = vld [vmem:[%s5509_s2 + $0x160] sm:$0xff]  ;;  %v48_v43 = vld [vmem:[%s5508_s0 + $0x68] sm:$0xff]  ;;  %v289_v45 = vld [vmem:[%s5509_s2 + $0x170] sm:$0xff] }
  0x19   :  { %3464 = vmatpush3.bf16.msra.mxu0 %v3461_v35  ;;  %3492 = vmatpush3.bf16.msra.mxu1 %v4163_v56  ;;  %v286_v35 = vld [vmem:[%s5509_s2 + $0x158] sm:$0xff]  ;;  %v273_v48 = vld [vmem:[%s5509_s2 + $0xf0] sm:$0xff]  ;;  %v4341_v59 = vld [vmem:[%s5510_s7] ss:$0 sm:$0xff] }
  0x1a   :  { %3466 = vmatprep.subr.bf16.mxu0 %v3465_v44  ;;  %3494 = vmatprep.subr.bf16.mxu1 %v4166_v57  ;;  %v4286_v37 = vpack.c.bf16 %v286_v35, %v285_v34  ;;  %v290_v46 = vld [vmem:[%s5509_s2 + $0x178] sm:$0xff]  ;;  %v790_v27 = vld [vmem:[%s5511_s3] sm:$0xff]  ;;  %v824_v34 = vld [vmem:[%s5511_s3 + $0x110] sm:$0xff] }
  0x1b   :  { %v4313_v47 = vpack.c.bf16 %v290_v46, %v289_v45  ;;  %v274_v51 = vld [vmem:[%s5509_s2 + $0xf8] sm:$0xff]  ;;  %v811_v45 = vld [vmem:[%s5511_s3 + $0xa8] sm:$0xff] }
  0x1c   :  { %v4321_v52 = vpack.c.bf16 %v274_v51, %v273_v48  ;;  %v258_v54 = vld [vmem:[%s5509_s2 + $0x78] sm:$0xff]  ;;  %v827_v48 = vld [vmem:[%s5511_s3 + $0x128] sm:$0xff] }
  0x1d   :  { %3468 = vmatpush3.bf16.msra.mxu0 %v3465_v44  ;;  %3496 = vmatpush3.bf16.msra.mxu1 %v4187_v0  ;;  %v4302_v44 = vpack.c.bf16 %v288_v42, %v287_v39  ;;  %v825_v35 = vld [vmem:[%s5511_s3 + $0x118] sm:$0xff]  ;;  %v792_v42 = vld [vmem:[%s5511_s3 + $0x10] sm:$0xff] }
  0x1e   :  { %3470 = vmatprep.subr.bf16.mxu0 %v3469_v53  ;;  %3498 = vmatprep.subr.bf16.mxu1 %v4211_v9  ;;  %v4467_v46 = vpack.c.bf16 %v825_v35, %v824_v34  ;;  %v821_v34 = vld [vmem:[%s5511_s3 + $0xf8] sm:$0xff]  ;;  %v834_v35 = vld [vmem:[%s5511_s3 + $0x160] sm:$0xff] }
  0x21   :  { %3472 = vmatpush3.bf16.msra.mxu0 %v3469_v53  ;;  %3500 = vmatpush3.bf16.msra.mxu1 %v4214_v10  ;;  %v257_v53 = vld [vmem:[%s5509_s2 + $0x70] sm:$0xff] }
  0x22   :  { %3505 = vmatprep.subr.bf16.mxu0 %v3972_v6  ;;  %v4330_v55 = vpack.c.bf16 %v258_v54, %v257_v53  ;;  %3502 = vmatprep.subr.bf16.mxu1 %v4321_v52 }
  0x24   :  { %3139 = vmatmul.mubr.f32.vlgmr.msra.gmra.mrb[0].mxu0 %v36_v1 }
  0x25   :  { %3141 = vmatprep.mubr.f32.mxu0 %v37_v5  ;;  %3507 = vmatpush3.bf16.msra.mxu0 %v4192_v2 }
  0x26   :  { %3508 = vmatprep.subr.bf16.mxu0 %v3972_v6  ;;  %3504 = vmatpush3.bf16.msra.mxu1 %v4330_v55 }
  0x27   :  { %3530 = vmatprep.subr.bf16.mxu1 %v4065_v19 }
  0x28   :  { %3142 = vmatmul.mubr.f32.gmra.mrb[2].mxu0 %v38_v11 }
  0x29   :  { %3144 = vmatprep.mubr.f32.mxu0 %v39_v13  ;;  %3510 = vmatpush3.bf16.msra.mxu0 %v4220_v12 }
  0x2a   :  { %3511 = vmatprep.subr.bf16.mxu0 %v3972_v6 }
  0x2c   :  { %3145 = vmatmul.mubr.f32.gmra.mrb[4].mxu0 %v40_v16 }
  0x2d   :  { %3147 = vmatprep.mubr.f32.mxu0 %v41_v18  ;;  %3513 = vmatpush3.bf16.msra.mxu0 %v4238_v17 }
  0x2e   :  { %3514 = vmatprep.subr.bf16.mxu0 %v3972_v6 }
  0x30   :  { %3148 = vmatmul.mubr.f32.gmra.mrb[6].mxu0 %v42_v23  ;;  %v822_v23 = vld [vmem:[%s5511_s3 + $0x100] sm:$0xff] }
  0x31   :  { %3150 = vmatprep.mubr.f32.mxu0 %v43_v25  ;;  %3516 = vmatpush3.bf16.msra.mxu0 %v4254_v24 }
  0x32   :  { %3517 = vmatprep.subr.bf16.mxu0 %v3972_v6 }
  0x34   :  { %3151 = vmatmul.mubr.f32.gmra.mrb[8].mxu0 %v44_v29  ;;  %v808_v29 = vld [vmem:[%s5511_s3 + $0x90] sm:$0xff] }
  0x35   :  { %3153 = vmatprep.mubr.f32.mxu0 %v45_v33  ;;  %3519 = vmatpush3.bf16.msra.mxu0 %v4270_v31 }
  0x36   :  { %3520 = vmatprep.subr.bf16.mxu0 %v3972_v6 }
  0x38   :  { %3154 = vmatmul.mubr.f32.gmra.mrb[10].mxu0 %v46_v36 }
  0x39   :  { %3156 = vmatprep.mubr.f32.mxu0 %v47_v38  ;;  %3522 = vmatpush3.bf16.msra.mxu0 %v4286_v37 }
  0x3a   :  { %3523 = vmatprep.subr.bf16.mxu0 %v3972_v6 }
  0x3c   :  { %3157 = vmatmul.mubr.f32.gmra.mrb[12].mxu0 %v48_v43  ;;  %v793_v43 = vld [vmem:[%s5511_s3 + $0x18] sm:$0xff] }
  0x3d   :  { %3525 = vmatpush3.bf16.msra.mxu0 %v4302_v44  ;;  %3191 = vmatprep.mubr.msk.f32.mxu0 %vm3973_vm0, %v3974_v58  ;;  %v4478_v51 = vpack.c.bf16 %v793_v43, %v792_v42  ;;  %v804_v42 = vld [vmem:[%s5511_s3 + $0x70] sm:$0xff]  ;;  %v805_v43 = vld [vmem:[%s5511_s3 + $0x78] sm:$0xff] }
  0x3e   :  { %3526 = vmatprep.subr.bf16.mxu0 %v3972_v6 }
  0x41   :  { %3528 = vmatpush3.bf16.msra.mxu0 %v4313_v47 }
  0x42   :  { %3561 = vmatprep.subr.bf16.mxu0 %v3972_v6 }
  0xf7   :  { %v3140_v60 = vpop.f32.mrb[0].mxu0 }
  0xf8   :  { %v142_v61 = vadd.f32 %v3140_v60, %v4341_v59  ;;  %v136_v62 = vpop.f32.mrb[1].mxu0  ;;  %v795_v60 = vld [vmem:[%s5511_s3 + $0x28] sm:$0xff] }
  0xf9   :  { %v137_v63 = vadd.f32 %v4341_v59, %v136_v62  ;;  %v813_v62 = vld [vmem:[%s5511_s3 + $0xb8] sm:$0xff] }
  0xfa   :  { %v206_v1 = vmax.f32 %v142_v61, 0.0  ;;  %v812_v61 = vld [vmem:[%s5511_s3 + $0xb0] sm:$0xff] }
  0xfb   :  { %v205_v3 = vmax.f32 %v137_v63, 0.0  ;;  %v3143_v4 = vpop.f32.mrb[2].mxu0 }
  0xfc   :  { %3192 = vmatmul.mubr.f32.vlgmr.msra.gmra.mrb[14].mxu0 %v206_v1  ;;  %v146_v5 = vpop.f32.mrb[3].mxu0  ;;  %v152_v7 = vadd.f32 %v3143_v4, %v4341_v59 }
  0xfd   :  { %3563 = vmatpush3.bf16.msra.mxu0 %v4192_v2  ;;  %v147_v19 = vadd.f32 %v4341_v59, %v146_v5  ;;  %359 = vmatprep.mubr.f32.mxu1 %v205_v3 }
  0xfe   :  { %360 = vmatmul.mubr.f32.vlgmr.msra.gmra.mrb[0].mxu1 %v3974_v58  ;;  %3564 = vmatprep.subr.bf16.mxu0 %v3972_v6  ;;  %v208_v13 = vmax.f32 %v152_v7, 0.0  ;;  %v796_v7 = vld [vmem:[%s5511_s3 + $0x30] sm:$0xff] }
  0xff   :  { %v207_v8 = vmax.f32 %v147_v19, 0.0  ;;  %3532 = vmatpush3.bf16.msra.mxu1 %v4067_v20  ;;  %364 = vmatprep.mubr.f32.mxu1 %v206_v1  ;;  %v3146_v11 = vpop.f32.mrb[4].mxu0  ;;  %v4514_v19 = vpack.c.bf16 %v813_v62, %v812_v61  ;;  %v4665_v61 = vld [vmem:[%s5510_s7 + $0x1] ss:$0 sm:$0xff] }
 0x100   :  { %3194 = vmatprep.mubr.msk.f32.mxu0 %vm3973_vm0, %v3974_v58  ;;  %3534 = vmatprep.subr.bf16.mxu1 %v4088_v28  ;;  %v156_v2 = vpop.f32.mrb[5].mxu0  ;;  %v162_v28 = vadd.f32 %v3146_v11, %v4341_v59  ;;  %v814_v11 = vld [vmem:[%s5511_s3 + $0xc0] sm:$0xff] }
 0x101   :  { %3566 = vmatpush3.bf16.msra.mxu0 %v4220_v12  ;;  %v157_v14 = vadd.f32 %v4341_v59, %v156_v2  ;;  %v815_v2 = vld [vmem:[%s5511_s3 + $0xc8] sm:$0xff] }
 0x102   :  { %365 = vmatmul.mubr.f32.gmra.mrb[2].mxu1 %v205_v3  ;;  %3195 = vmatmul.mubr.f32.gmra.mrb[16].mxu0 %v207_v8  ;;  %v829_v3 = vld [vmem:[%s5511_s3 + $0x138] sm:$0xff] }
 0x103   :  { %3536 = vmatpush3.bf16.msra.mxu1 %v4094_v30  ;;  %3567 = vmatprep.subr.bf16.mxu0 %v3972_v6  ;;  %v3149_v20 = vpop.f32.mrb[6].mxu0  ;;  %v209_v12 = vmax.f32 %v157_v14, 0.0 }
 0x104   :  { %369 = vmatprep.mubr.f32.mxu1 %v207_v8  ;;  %3197 = vmatprep.mubr.msk.f32.mxu0 %vm3973_vm0, %v3974_v58  ;;  %v166_v15 = vpop.f32.mrb[7].mxu0 }
 0x105   :  { %3569 = vmatpush3.bf16.msra.mxu0 %v4238_v17  ;;  %3538 = vmatprep.subr.bf16.mxu1 %v4100_v32  ;;  %v210_v32 = vmax.f32 %v162_v28, 0.0  ;;  %v167_v17 = vadd.f32 %v4341_v59, %v166_v15  ;;  %v4541_v15 = vpack.c.bf16 %v815_v2, %v814_v11  ;;  %v798_v28 = vld [vmem:[%s5511_s3 + $0x40] sm:$0xff] }
 0x106   :  { %370 = vmatmul.mubr.f32.gmra.mrb[4].mxu1 %v206_v1  ;;  %3198 = vmatmul.mubr.f32.gmra.mrb[18].mxu0 %v208_v13  ;;  %v828_v1 = vld [vmem:[%s5511_s3 + $0x130] sm:$0xff] }
 0x107   :  { %3540 = vmatpush3.bf16.msra.mxu1 %v4121_v40  ;;  %374 = vmatprep.mubr.f32.mxu1 %v208_v13  ;;  %v3152_v30 = vpop.f32.mrb[8].mxu0  ;;  %v211_v21 = vmax.f32 %v167_v17, 0.0 }
 0x108   :  { %3570 = vmatprep.subr.bf16.mxu0 %v3972_v6  ;;  %3200 = vmatprep.mubr.msk.f32.mxu0 %vm3973_vm0, %v3974_v58  ;;  %v176_v16 = vpop.f32.mrb[9].mxu0 }
 0x109   :  { %3572 = vmatpush3.bf16.msra.mxu0 %v4254_v24  ;;  %3542 = vmatprep.subr.bf16.mxu1 %v4124_v41  ;;  %v172_v41 = vadd.f32 %v3149_v20, %v4341_v59  ;;  %v823_v24 = vld [vmem:[%s5511_s3 + $0x108] sm:$0xff] }
 0x10a   :  { %375 = vmatmul.mubr.f32.gmra.mrb[6].mxu1 %v207_v8  ;;  %3201 = vmatmul.mubr.f32.gmra.mrb[20].mxu0 %v209_v12  ;;  %v4435_v33 = vpack.c.bf16 %v823_v24, %v822_v23  ;;  %v797_v8 = vld [vmem:[%s5511_s3 + $0x38] sm:$0xff]  ;;  %v832_v24 = vld [vmem:[%s5511_s3 + $0x150] sm:$0xff] }
 0x10b   :  { %3544 = vmatpush3.bf16.msra.mxu1 %v4145_v49  ;;  %3573 = vmatprep.subr.bf16.mxu0 %v3972_v6  ;;  %v4372_v40 = vpop.f32.mrb[10].mxu0  ;;  %v4538_v20 = vpack.c.bf16 %v797_v8, %v796_v7 }
 0x10c   :  { %379 = vmatprep.mubr.f32.mxu1 %v209_v12  ;;  %3203 = vmatprep.mubr.msk.f32.mxu0 %vm3973_vm0, %v3974_v58  ;;  %v186_v18 = vpop.f32.mrb[11].mxu0 }
 0x10d   :  { %3575 = vmatpush3.bf16.msra.mxu0 %v4270_v31  ;;  %3546 = vmatprep.subr.bf16.mxu1 %v4148_v50  ;;  %v4389_v50 = vmax.f32 %v172_v41, 0.0  ;;  %v809_v31 = vld [vmem:[%s5511_s3 + $0x98] sm:$0xff]  ;;  %v187_v38 = vadd.f32 %v4341_v59, %v186_v18  ;;  %v830_v18 = vld [vmem:[%s5511_s3 + $0x140] sm:$0xff] }
 0x10e   :  { %380 = vmatmul.mubr.f32.gmra.mrb[8].mxu1 %v208_v13  ;;  %3204 = vmatmul.mubr.f32.gmra.mrb[22].mxu0 %v210_v32  ;;  %v4450_v39 = vpack.c.bf16 %v809_v31, %v808_v29  ;;  %v4531_v13 = vpack.c.bf16 %v829_v3, %v828_v1  ;;  %v820_v31 = vld [vmem:[%s5511_s3 + $0xf0] sm:$0xff] }
 0x10f   :  { %3548 = vmatpush3.bf16.msra.mxu1 %v4163_v56  ;;  %384 = vmatprep.mubr.f32.mxu1 %v210_v32  ;;  %v4380_v49 = vpop.f32.mrb[12].mxu0  ;;  %v177_v56 = vadd.f32 %v4341_v59, %v176_v16  ;;  %v215_v53 = vmax.f32 %v187_v38, 0.0  ;;  %v835_v38 = vld [vmem:[%s5511_s3 + $0x168] sm:$0xff] }
 0x110   :  { %3576 = vmatprep.subr.bf16.mxu0 %v3972_v6  ;;  %3206 = vmatprep.mubr.msk.f32.mxu0 %vm3973_vm0, %v3974_v58  ;;  %v4385_v22 = vpop.f32.mrb[13].mxu0 }
 0x111   :  { %3578 = vmatpush3.bf16.msra.mxu0 %v4286_v37  ;;  %3550 = vmatprep.subr.bf16.mxu1 %v4166_v57  ;;  %v806_v57 = vld [vmem:[%s5511_s3 + $0x80] sm:$0xff]  ;;  %v4414_v25 = vmax.f32 %v177_v56, 0.0  ;;  %v197_v14 = vadd.f32 %v4341_v59, %v4385_v22  ;;  %v801_v22 = vld [vmem:[%s5511_s3 + $0x58] sm:$0xff] }
 0x112   :  { %385 = vmatmul.mubr.f32.gmra.mrb[10].mxu1 %v209_v12  ;;  %3207 = vmatmul.mubr.f32.gmra.mrb[24].mxu0 %v211_v21  ;;  %v799_v12 = vld [vmem:[%s5511_s3 + $0x48] sm:$0xff] }
 0x113   :  { %3552 = vmatpush3.bf16.msra.mxu1 %v4187_v0  ;;  %3579 = vmatprep.subr.bf16.mxu0 %v3972_v6  ;;  %v807_v0 = vld [vmem:[%s5511_s3 + $0x88] sm:$0xff]  ;;  %v217_v16 = vmax.f32 %v197_v14, 0.0 }
 0x114   :  { %389 = vmatprep.mubr.f32.mxu1 %v211_v21  ;;  %3209 = vmatprep.mubr.msk.f32.mxu0 %vm3973_vm0, %v3974_v58  ;;  %v4418_v26 = vpack.c.bf16 %v807_v0, %v806_v57  ;;  %v818_v57 = vld [vmem:[%s5511_s3 + $0xe0] sm:$0xff]  ;;  %v819_v0 = vld [vmem:[%s5511_s3 + $0xe8] sm:$0xff] }
 0x115   :  { %3581 = vmatpush3.bf16.msra.mxu0 %v4302_v44  ;;  %3554 = vmatprep.subr.bf16.mxu1 %v4211_v9  ;;  %v182_v9 = vadd.f32 %v3152_v30, %v4341_v59  ;;  %v810_v44 = vld [vmem:[%s5511_s3 + $0xa0] sm:$0xff]  ;;  %v202_v30 = vadd.f32 %v4380_v49, %v4341_v59  ;;  %v800_v49 = vld [vmem:[%s5511_s3 + $0x50] sm:$0xff]  ;;  %v4601_v23 = vpack.c.bf16 %v819_v0, %v818_v57 }
 0x116   :  { %390 = vmatmul.mubr.f32.gmra.mrb[12].mxu1 %v210_v32  ;;  %3210 = vmatmul.mubr.f32.gmra.mrb[26].mxu0 %v4389_v50  ;;  %v4483_v54 = vpack.c.bf16 %v811_v45, %v810_v44  ;;  %v4556_v32 = vpack.c.bf16 %v799_v12, %v798_v28  ;;  %v4589_v56 = vpack.c.bf16 %v801_v22, %v800_v49 }
 0x117   :  { %3556 = vmatpush3.bf16.msra.mxu1 %v4214_v10  ;;  %630 = vmatprep.mubr.f32.mxu1 %v4389_v50  ;;  %v791_v10 = vld [vmem:[%s5511_s3 + $0x8] sm:$0xff]  ;;  %v214_v37 = vmax.f32 %v182_v9, 0.0  ;;  %v218_v17 = vmax.f32 %v202_v30, 0.0  ;;  %v833_v9 = vld [vmem:[%s5511_s3 + $0x158] sm:$0xff]  ;;  %v4643_v44 = vpack.c.bf16 %v835_v38, %v834_v35  ;;  %v4645_v45 = vpack.c.bf16 %v805_v43, %v804_v42 }
 0x118   :  { %3582 = vmatprep.subr.bf16.mxu0 %v3972_v6  ;;  %3558 = vmatprep.subr.bf16.mxu1 %v4321_v52  ;;  %v4445_v36 = vpack.c.bf16 %v791_v10, %v790_v27  ;;  %v192_v52 = vadd.f32 %v4372_v40, %v4341_v59  ;;  %v816_v59 = vld [vmem:[%s5511_s3 + $0xd0] sm:$0xff]  ;;  %v817_v40 = vld [vmem:[%s5511_s3 + $0xd8] sm:$0xff]  ;;  %v4612_v27 = vpack.c.bf16 %v833_v9, %v832_v24  ;;  %v803_v10 = vld [vmem:[%s5511_s3 + $0x68] sm:$0xff] }
 0x119   :  { %3584 = vmatpush3.bf16.msra.mxu0 %v4313_v47  ;;  %3244 = vmatprep.mubr.msk.f32.mxu0 %vm3973_vm0, %v3974_v58  ;;  %v826_v47 = vld [vmem:[%s5511_s3 + $0x120] sm:$0xff]  ;;  %v4576_v41 = vpack.c.bf16 %v817_v40, %v816_v59 }
 0x11a   :  { %3617 = vmatprep.subr.bf16.mxu0 %v3972_v6  ;;  %v4500_v63 = vpack.c.bf16 %v827_v48, %v826_v47  ;;  %v216_v5 = vmax.f32 %v192_v52, 0.0  ;;  %v836_v47 = vld [vmem:[%s5511_s3 + $0x170] sm:$0xff]  ;;  %v837_v48 = vld [vmem:[%s5511_s3 + $0x178] sm:$0xff] }
 0x11b   :  { %3560 = vmatpush3.bf16.msra.mxu1 %v4330_v55  ;;  %v794_v55 = vld [vmem:[%s5511_s3 + $0x20] sm:$0xff]  ;;  %v4657_v52 = vpack.c.bf16 %v837_v48, %v836_v47 }
 0x11c   :  { %3245 = vmatmul.mubr.f32.vlgmr.msra.gmra.mrb[28].mxu0 %v4414_v25  ;;  %3586 = vmatprep.subr.bf16.mxu1 %v4418_v26  ;;  %v4511_v4 = vpack.c.bf16 %v795_v60, %v794_v55 }
 0x11d   :  { %3247 = vmatprep.mubr.msk.f32.mxu0 %vm3973_vm0, %v3974_v58  ;;  %3619 = vmatpush3.bf16.msra.mxu0 %v4435_v33 }
 0x11e   :  { %631 = vmatmul.mubr.f32.vlgmr.msra.gmra.mrb[14].mxu1 %v211_v21  ;;  %3620 = vmatprep.subr.bf16.mxu0 %v3972_v6  ;;  %v831_v21 = vld [vmem:[%s5511_s3 + $0x148] sm:$0xff] }
 0x11f   :  { %635 = vmatprep.mubr.f32.mxu1 %v4414_v25  ;;  %3588 = vmatpush3.bf16.msra.mxu1 %v4445_v36 }
 0x120   :  { %3248 = vmatmul.mubr.f32.gmra.mrb[30].mxu0 %v214_v37  ;;  %3590 = vmatprep.subr.bf16.mxu1 %v4450_v39 }
 0x121   :  { %3250 = vmatprep.mubr.msk.f32.mxu0 %vm3973_vm0, %v3974_v58  ;;  %3622 = vmatpush3.bf16.msra.mxu0 %v4467_v46 }
 0x122   :  { %636 = vmatmul.mubr.f32.gmra.mrb[16].mxu1 %v4389_v50  ;;  %3623 = vmatprep.subr.bf16.mxu0 %v3972_v6  ;;  %v4587_v50 = vpack.c.bf16 %v831_v21, %v830_v18 }
 0x123   :  { %640 = vmatprep.mubr.f32.mxu1 %v214_v37  ;;  %3592 = vmatpush3.bf16.msra.mxu1 %v4478_v51 }
 0x124   :  { %3251 = vmatmul.mubr.f32.gmra.mrb[32].mxu0 %v215_v53  ;;  %3594 = vmatprep.subr.bf16.mxu1 %v4483_v54 }
 0x125   :  { %3253 = vmatprep.mubr.msk.f32.mxu0 %vm3973_vm0, %v3974_v58  ;;  %3625 = vmatpush3.bf16.msra.mxu0 %v4500_v63 }
 0x126   :  { %641 = vmatmul.mubr.f32.gmra.mrb[18].mxu1 %v4414_v25  ;;  %3626 = vmatprep.subr.bf16.mxu0 %v3972_v6  ;;  %v802_v25 = vld [vmem:[%s5511_s3 + $0x60] sm:$0xff] }
 0x127   :  { %645 = vmatprep.mubr.f32.mxu1 %v215_v53  ;;  %3596 = vmatpush3.bf16.msra.mxu1 %v4511_v4  ;;  %v4618_v29 = vpack.c.bf16 %v803_v10, %v802_v25 }
 0x128   :  { %3254 = vmatmul.mubr.f32.gmra.mrb[34].mxu0 %v216_v5  ;;  %3598 = vmatprep.subr.bf16.mxu1 %v4514_v19 }
 0x129   :  { %3256 = vmatprep.mubr.msk.f32.mxu0 %vm3973_vm0, %v3974_v58  ;;  %3628 = vmatpush3.bf16.msra.mxu0 %v4531_v13 }
 0x12a   :  { %646 = vmatmul.mubr.f32.gmra.mrb[20].mxu1 %v214_v37  ;;  %3629 = vmatprep.subr.bf16.mxu0 %v3972_v6  ;;  %v4632_v37 = vpack.c.bf16 %v821_v34, %v820_v31 }
 0x12b   :  { %650 = vmatprep.mubr.f32.mxu1 %v216_v5  ;;  %3600 = vmatpush3.bf16.msra.mxu1 %v4538_v20 }
 0x12c   :  { %3257 = vmatmul.mubr.f32.gmra.mrb[36].mxu0 %v217_v16  ;;  %3602 = vmatprep.subr.bf16.mxu1 %v4541_v15 }
 0x12d   :  { %3259 = vmatprep.mubr.msk.f32.mxu0 %vm3973_vm0, %v3974_v58  ;;  %3631 = vmatpush3.bf16.msra.mxu0 %v4587_v50 }
 0x12e   :  { %651 = vmatmul.mubr.f32.gmra.mrb[22].mxu1 %v215_v53  ;;  %3632 = vmatprep.subr.bf16.mxu0 %v3972_v6 }
 0x12f   :  { %655 = vmatprep.mubr.f32.mxu1 %v217_v16  ;;  %3604 = vmatpush3.bf16.msra.mxu1 %v4556_v32 }
 0x130   :  { %3260 = vmatmul.mubr.f32.gmra.mrb[38].mxu0 %v218_v17  ;;  %3606 = vmatprep.subr.bf16.mxu1 %v4576_v41 }
 0x131   :  { %3262 = vmatprep.mubr.msk.f32.mxu0 %vm3973_vm0, %v3974_v58  ;;  %3634 = vmatpush3.bf16.msra.mxu0 %v4612_v27 }
 0x132   :  { %656 = vmatmul.mubr.f32.gmra.mrb[24].mxu1 %v216_v5  ;;  %3635 = vmatprep.subr.bf16.mxu0 %v3972_v6 }
 0x133   :  { %660 = vmatprep.mubr.f32.mxu1 %v218_v17  ;;  %3608 = vmatpush3.bf16.msra.mxu1 %v4589_v56 }
 0x134   :  { %3263 = vmatmul.mubr.f32.gmra.mrb[40].mxu0 %v3974_v58  ;;  %3610 = vmatprep.subr.bf16.mxu1 %v4601_v23 }
 0x135   :  { %3297 = vmatprep.mubr.msk.f32.mxu0 %vm3973_vm0, %v3974_v58  ;;  %3637 = vmatpush3.bf16.msra.mxu0 %v4643_v44 }
 0x136   :  { %661 = vmatmul.mubr.f32.gmra.mrb[26].mxu1 %v217_v16  ;;  %3638 = vmatprep.subr.bf16.mxu0 %v3972_v6 }
 0x137   :  { %3612 = vmatpush3.bf16.msra.mxu1 %v4618_v29 }
 0x138   :  { %3614 = vmatprep.subr.bf16.mxu1 %v4632_v37 }
 0x139   :  { %3640 = vmatpush3.bf16.msra.mxu0 %v4657_v52 }
 0x13a   :  { %3673 = vmatprep.subr.bf16.mxu0 %v3972_v6 }
 0x13b   :  { %3616 = vmatpush3.bf16.msra.mxu1 %v4645_v45 }
 0x13c   :  { %3642 = vmatprep.subr.bf16.mxu1 %v4418_v26 }
 0x1cf   :  { %v461_v53 = vpop.f32.mrb[14].mxu0 }
 0x1d0   :  { %v3193_v55 = vpop.f32.mrb[15].mxu0 }
 0x1d1   :  { %v2483_v60 = vpop.f32.mrb[0].mxu1 }
 0x1d2   :  { %v2484_v62 = vpop.f32.mrb[1].mxu1 }
 0x1d3   :  { %v2485_v1 = vadd.f32 %v2484_v62, %v2483_v60 }
 0x1d5   :  { %v362_v3 = vadd.f32 %v2485_v1, %v4665_v61  ;;  %v2486_v5 = vpop.f32.mrb[2].mxu1  ;;  %v466_v7 = vpop.f32.mrb[16].mxu0 }
 0x1d6   :  { %v2487_v8 = vpop.f32.mrb[3].mxu1  ;;  %v3196_v26 = vpop.f32.mrb[17].mxu0 }
 0x1d7   :  { %v2488_v11 = vadd.f32 %v2487_v8, %v2486_v5  ;;  %v462_v2 = vadd.f32 %v461_v53, %v362_v3 }
 0x1d9   :  { %v367_v14 = vadd.f32 %v2488_v11, %v4665_v61  ;;  %v2489_v28 = vpop.f32.mrb[4].mxu1  ;;  %v471_v12 = vpop.f32.mrb[18].mxu0  ;;  %v495_v30 = vmax.f32 %v462_v2, 0.0 }
 0x1da   :  { %v2490_v16 = vpop.f32.mrb[5].mxu1  ;;  %v3199_v17 = vpop.f32.mrb[19].mxu0 }
 0x1db   :  { %v467_v59 = vadd.f32 %v466_v7, %v367_v14  ;;  %v2491_v40 = vadd.f32 %v2490_v16, %v2489_v28  ;;  %906 = vmatprep.mubr.f32.mxu1 %v495_v30  ;;  %v1357_v17 = vld [vmem:[%s5512_s4 + $0x98] sm:$0xff] }
 0x1dc   :  { %907 = vmatmul.mubr.f32.vlgmr.msra.gmra.mrb[28].mxu1 %v3974_v58 }
 0x1dd   :  { %v496_v18 = vmax.f32 %v467_v59, 0.0  ;;  %v372_v21 = vadd.f32 %v2491_v40, %v4665_v61  ;;  %3644 = vmatpush3.bf16.msra.mxu1 %v4445_v36  ;;  %v2492_v49 = vpop.f32.mrb[6].mxu1  ;;  %v476_v22 = vpop.f32.mrb[20].mxu0  ;;  %v1386_v59 = vld [vmem:[%s5512_s4 + $0x180] sm:$0xff]  ;;  %v1387_v40 = vld [vmem:[%s5512_s4 + $0x188] sm:$0xff] }
 0x1de   :  { %v2493_v57 = vpop.f32.mrb[7].mxu1  ;;  %3646 = vmatprep.subr.bf16.mxu1 %v4450_v39  ;;  %v3202_v0 = vpop.f32.mrb[21].mxu0 }
 0x1df   :  { %v2494_v24 = vadd.f32 %v2493_v57, %v2492_v49  ;;  %911 = vmatprep.mubr.f32.mxu1 %v496_v18  ;;  %3298 = vmatmul.mubr.f32.vlgmr.msra.gmra.mrb[42].mxu0 %v496_v18  ;;  %v472_v9 = vadd.f32 %v471_v12, %v372_v21  ;;  %v1339_v12 = vld [vmem:[%s5512_s4 + $0x8] sm:$0xff]  ;;  %v1340_v0 = vld [vmem:[%s5512_s4 + $0x10] sm:$0xff] }
 0x1e0   :  { %3675 = vmatpush3.bf16.msra.mxu0 %v4435_v33  ;;  %912 = vmatmul.mubr.f32.gmra.mrb[30].mxu1 %v495_v30 }
 0x1e1   :  { %v377_v25 = vadd.f32 %v2494_v24, %v4665_v61  ;;  %3648 = vmatpush3.bf16.msra.mxu1 %v4478_v51  ;;  %v2495_v10 = vpop.f32.mrb[8].mxu1  ;;  %v481_v31 = vpop.f32.mrb[22].mxu0  ;;  %3300 = vmatprep.mubr.msk.f32.mxu0 %vm3973_vm0, %v3974_v58  ;;  %v497_v36 = vmax.f32 %v472_v9, 0.0  ;;  %v1341_v24 = vld [vmem:[%s5512_s4 + $0x18] sm:$0xff] }
 0x1e2   :  { %v2496_v34 = vpop.f32.mrb[9].mxu1  ;;  %v3205_v39 = vpop.f32.mrb[23].mxu0  ;;  %3676 = vmatprep.subr.bf16.mxu0 %v3972_v6  ;;  %3650 = vmatprep.subr.bf16.mxu1 %v4483_v54 }
 0x1e3   :  { %v477_v35 = vadd.f32 %v476_v22, %v377_v25  ;;  %v2497_v38 = vadd.f32 %v2496_v34, %v2495_v10  ;;  %916 = vmatprep.mubr.f32.mxu1 %v497_v36  ;;  %3301 = vmatmul.mubr.f32.gmra.mrb[44].mxu0 %v497_v36  ;;  %v4758_v25 = vpack.c.bf16 %v1387_v40, %v1386_v59  ;;  %v1370_v10 = vld [vmem:[%s5512_s4 + $0x100] sm:$0xff]  ;;  %v1393_v59 = vld [vmem:[%s5512_s4 + $0x1b8] sm:$0xff] }
 0x1e4   :  { %3678 = vmatpush3.bf16.msra.mxu0 %v4467_v46  ;;  %917 = vmatmul.mubr.f32.gmra.mrb[32].mxu1 %v496_v18 }
 0x1e5   :  { %v498_v33 = vmax.f32 %v477_v35, 0.0  ;;  %v382_v51 = vadd.f32 %v2497_v38, %v4665_v61  ;;  %3652 = vmatpush3.bf16.msra.mxu1 %v4511_v4  ;;  %v2498_v42 = vpop.f32.mrb[10].mxu1  ;;  %3303 = vmatprep.mubr.msk.f32.mxu0 %vm3973_vm0, %v3974_v58  ;;  %v486_v43 = vpop.f32.mrb[24].mxu0  ;;  %v1359_v35 = vld [vmem:[%s5512_s4 + $0xa8] sm:$0xff]  ;;  %v1388_v38 = vld [vmem:[%s5512_s4 + $0x190] sm:$0xff] }
 0x1e6   :  { %v2499_v47 = vpop.f32.mrb[11].mxu1  ;;  %3679 = vmatprep.subr.bf16.mxu0 %v3972_v6  ;;  %3654 = vmatprep.subr.bf16.mxu1 %v4514_v19  ;;  %v3208_v54 = vpop.f32.mrb[25].mxu0 }
 0x1e7   :  { %v2500_v48 = vadd.f32 %v2499_v47, %v2498_v42  ;;  %921 = vmatprep.mubr.f32.mxu1 %v498_v33  ;;  %3304 = vmatmul.mubr.f32.gmra.mrb[46].mxu0 %v498_v33  ;;  %v482_v46 = vadd.f32 %v481_v31, %v382_v51  ;;  %v1371_v31 = vld [vmem:[%s5512_s4 + $0x108] sm:$0xff]  ;;  %v4780_v54 = vpack.c.bf16 %v1341_v24, %v1340_v0  ;;  %v1346_v0 = vld [vmem:[%s5512_s4 + $0x40] sm:$0xff] }
 0x1e8   :  { %3681 = vmatpush3.bf16.msra.mxu0 %v4500_v63  ;;  %922 = vmatmul.mubr.f32.gmra.mrb[34].mxu1 %v497_v36 }
 0x1e9   :  { %v387_v4 = vadd.f32 %v2500_v48, %v4665_v61  ;;  %3656 = vmatpush3.bf16.msra.mxu1 %v4538_v20  ;;  %v2501_v53 = vpop.f32.mrb[12].mxu1  ;;  %v491_v55 = vpop.f32.mrb[26].mxu0  ;;  %3306 = vmatprep.mubr.msk.f32.mxu0 %vm3973_vm0, %v3974_v58  ;;  %v499_v60 = vmax.f32 %v482_v46, 0.0  ;;  %v1342_v48 = vld [vmem:[%s5512_s4 + $0x20] sm:$0xff]  ;;  %v4788_v46 = vpack.c.bf16 %v1371_v31, %v1370_v10  ;;  %v1347_v10 = vld [vmem:[%s5512_s4 + $0x48] sm:$0xff] }
 0x1ea   :  { %v2502_v62 = vpop.f32.mrb[13].mxu1  ;;  %v3211_v19 = vpop.f32.mrb[27].mxu0  ;;  %3682 = vmatprep.subr.bf16.mxu0 %v3972_v6  ;;  %3658 = vmatprep.subr.bf16.mxu1 %v4541_v15 }
 0x1eb   :  { %v487_v1 = vadd.f32 %v486_v43, %v387_v4  ;;  %v2503_v3 = vadd.f32 %v2502_v62, %v2501_v53  ;;  %926 = vmatprep.mubr.f32.mxu1 %v499_v60  ;;  %3307 = vmatmul.mubr.f32.gmra.mrb[48].mxu0 %v499_v60  ;;  %v1372_v62 = vld [vmem:[%s5512_s4 + $0x110] sm:$0xff]  ;;  %v1373_v19 = vld [vmem:[%s5512_s4 + $0x118] sm:$0xff] }
 0x1ec   :  { %3684 = vmatpush3.bf16.msra.mxu0 %v4531_v13  ;;  %927 = vmatmul.mubr.f32.gmra.mrb[36].mxu1 %v498_v33  ;;  %v1389_v33 = vld [vmem:[%s5512_s4 + $0x198] sm:$0xff] }
 0x1ed   :  { %v500_v63 = vmax.f32 %v487_v1, 0.0  ;;  %v392_v20 = vadd.f32 %v2503_v3, %v4665_v61  ;;  %3660 = vmatpush3.bf16.msra.mxu1 %v4556_v32  ;;  %3309 = vmatprep.mubr.msk.f32.mxu0 %vm3973_vm0, %v3974_v58 }
 0x1ee   :  { %3685 = vmatprep.subr.bf16.mxu0 %v3972_v6  ;;  %3662 = vmatprep.subr.bf16.mxu1 %v4576_v41 }
 0x1ef   :  { %931 = vmatprep.mubr.f32.mxu1 %v500_v63  ;;  %3310 = vmatmul.mubr.f32.gmra.mrb[50].mxu0 %v500_v63  ;;  %v732_v15 = vpop.f32.mrb[28].mxu0  ;;  %v492_v5 = vadd.f32 %v491_v55, %v392_v20  ;;  %v1360_v55 = vld [vmem:[%s5512_s4 + $0xb0] sm:$0xff]  ;;  %v1361_v20 = vld [vmem:[%s5512_s4 + $0xb8] sm:$0xff] }
 0x1f0   :  { %3687 = vmatpush3.bf16.msra.mxu0 %v4587_v50  ;;  %932 = vmatmul.mubr.f32.gmra.mrb[38].mxu1 %v499_v60  ;;  %v3246_v13 = vpop.f32.mrb[29].mxu0  ;;  %v1354_v50 = vld [vmem:[%s5512_s4 + $0x80] sm:$0xff]  ;;  %v4797_v60 = vpack.c.bf16 %v1389_v33, %v1388_v38  ;;  %v1364_v33 = vld [vmem:[%s5512_s4 + $0xd0] sm:$0xff] }
 0x1f1   :  { %v2559_v7 = vpop.f32.mrb[14].mxu1  ;;  %3664 = vmatpush3.bf16.msra.mxu1 %v4589_v56  ;;  %3312 = vmatprep.mubr.msk.f32.mxu0 %vm3973_vm0, %v3974_v58  ;;  %v501_v32 = vmax.f32 %v492_v5, 0.0  ;;  %v1355_v56 = vld [vmem:[%s5512_s4 + $0x88] sm:$0xff] }
 0x1f2   :  { %v2560_v8 = vpop.f32.mrb[15].mxu1  ;;  %3688 = vmatprep.subr.bf16.mxu0 %v3972_v6  ;;  %3666 = vmatprep.subr.bf16.mxu1 %v4601_v23  ;;  %v4720_v28 = vpack.c.bf16 %v1355_v56, %v1354_v50  ;;  %v1391_v5 = vld [vmem:[%s5512_s4 + $0x1a8] sm:$0xff]  ;;  %v1345_v50 = vld [vmem:[%s5512_s4 + $0x38] sm:$0xff]  ;;  %v4827_v56 = vpack.c.bf16 %v1373_v19, %v1372_v62  ;;  %v1348_v19 = vld [vmem:[%s5512_s4 + $0x50] sm:$0xff] }
 0x1f3   :  { %v2561_v41 = vadd.f32 %v2560_v8, %v2559_v7  ;;  %v737_v26 = vpop.f32.mrb[30].mxu0  ;;  %936 = vmatprep.mubr.f32.mxu1 %v501_v32  ;;  %3313 = vmatmul.mubr.f32.gmra.mrb[52].mxu0 %v501_v32 }
 0x1f4   :  { %v3249_v11 = vpop.f32.mrb[31].mxu0  ;;  %3690 = vmatpush3.bf16.msra.mxu0 %v4612_v27  ;;  %937 = vmatmul.mubr.f32.gmra.mrb[40].mxu1 %v500_v63  ;;  %v1338_v27 = vld [vmem:[%s5512_s4] sm:$0xff] }
 0x1f5   :  { %v633_v2 = vadd.f32 %v2561_v41, %v4665_v61  ;;  %v2562_v14 = vpop.f32.mrb[16].mxu1  ;;  %3668 = vmatpush3.bf16.msra.mxu1 %v4618_v29  ;;  %3691 = vmatprep.subr.bf16.mxu0 %v3972_v6  ;;  %v1356_v29 = vld [vmem:[%s5512_s4 + $0x90] sm:$0xff]  ;;  %v4744_v57 = vpack.c.bf16 %v1339_v12, %v1338_v27  ;;  %v1374_v27 = vld [vmem:[%s5512_s4 + $0x120] sm:$0xff]  ;;  %v1375_v12 = vld [vmem:[%s5512_s4 + $0x128] sm:$0xff] }
 0x1f6   :  { %v2563_v23 = vpop.f32.mrb[17].mxu1  ;;  %3670 = vmatprep.subr.bf16.mxu1 %v4632_v37  ;;  %3315 = vmatprep.mubr.msk.f32.mxu0 %vm3973_vm0, %v3974_v58  ;;  %v4753_v9 = vpack.c.bf16 %v1357_v17, %v1356_v29  ;;  %v1392_v17 = vld [vmem:[%s5512_s4 + $0x1b0] sm:$0xff]  ;;  %v4863_v24 = vpack.c.bf16 %v1375_v12, %v1374_v27 }
 0x1f7   :  { %v2564_v30 = vadd.f32 %v2563_v23, %v2562_v14  ;;  %v733_v16 = vadd.f32 %v732_v15, %v633_v2  ;;  %v742_v37 = vpop.f32.mrb[32].mxu0  ;;  %v1390_v15 = vld [vmem:[%s5512_s4 + $0x1a0] sm:$0xff]  ;;  %v4830_v2 = vpack.c.bf16 %v1361_v20, %v1360_v55  ;;  %v4872_v31 = vpack.c.bf16 %v1393_v59, %v1392_v17  ;;  %v1369_v17 = vld [vmem:[%s5512_s4 + $0xf8] sm:$0xff]  ;;  %v1396_v59 = vld [vmem:[%s5512_s4 + $0x1d0] sm:$0xff] }
 0x1f8   :  { %3693 = vmatpush3.bf16.msra.mxu0 %v4643_v44  ;;  %v3252_v18 = vpop.f32.mrb[33].mxu0  ;;  %v1362_v14 = vld [vmem:[%s5512_s4 + $0xc0] sm:$0xff]  ;;  %v4836_v23 = vpack.c.bf16 %v1391_v5, %v1390_v15 }
 0x1f9   :  { %v638_v21 = vadd.f32 %v2564_v30, %v4665_v61  ;;  %v2565_v49 = vpop.f32.mrb[18].mxu1  ;;  %3672 = vmatpush3.bf16.msra.mxu1 %v4645_v45  ;;  %v766_v22 = vmax.f32 %v733_v16, 0.0  ;;  %3694 = vmatprep.subr.bf16.mxu0 %v3972_v6  ;;  %v1358_v45 = vld [vmem:[%s5512_s4 + $0xa0] sm:$0xff] }
 0x1fa   :  { %v2566_v44 = vpop.f32.mrb[19].mxu1  ;;  %3698 = vmatprep.subr.bf16.mxu1 %v4720_v28  ;;  %v4791_v53 = vpack.c.bf16 %v1359_v35, %v1358_v45 }
 0x1fb   :  { %v2567_v36 = vadd.f32 %v2566_v44, %v2565_v49  ;;  %3316 = vmatmul.mubr.f32.gmra.mrb[54].mxu0 %v766_v22  ;;  %1177 = vmatprep.mubr.f32.mxu1 %v766_v22  ;;  %v747_v34 = vpop.f32.mrb[34].mxu0  ;;  %v738_v39 = vadd.f32 %v737_v26, %v638_v21  ;;  %v1344_v26 = vld [vmem:[%s5512_s4 + $0x30] sm:$0xff] }
 0x1fc   :  { %1178 = vmatmul.mubr.f32.vlgmr.msra.gmra.mrb[42].mxu1 %v501_v32  ;;  %3696 = vmatpush3.bf16.msra.mxu0 %v4657_v52  ;;  %v3255_v51 = vpop.f32.mrb[35].mxu0  ;;  %v1343_v52 = vld [vmem:[%s5512_s4 + $0x28] sm:$0xff] }
 0x1fd   :  { %v643_v42 = vadd.f32 %v2567_v36, %v4665_v61  ;;  %v2568_v43 = vpop.f32.mrb[20].mxu1  ;;  %3350 = vmatprep.mubr.msk.f32.mxu0 %vm3973_vm0, %v3974_v58  ;;  %v767_v47 = vmax.f32 %v738_v39, 0.0  ;;  %3700 = vmatpush3.bf16.msra.mxu1 %v4744_v57  ;;  %v4818_v41 = vpack.c.bf16 %v1343_v52, %v1342_v48  ;;  %v1376_v36 = vld [vmem:[%s5512_s4 + $0x130] sm:$0xff]  ;;  %v1365_v51 = vld [vmem:[%s5512_s4 + $0xd8] sm:$0xff]  ;;  %v4890_v52 = vpack.c.bf16 %v1347_v10, %v1346_v0 }
 0x1fe   :  { %v2569_v4 = vpop.f32.mrb[21].mxu1  ;;  %3702 = vmatprep.subr.bf16.mxu1 %v4753_v9  ;;  %3730 = vmatprep.subr.bf16.mxu0 %v4758_v25  ;;  %v4896_v62 = vpack.c.bf16 %v1365_v51, %v1364_v33  ;;  %v1380_v10 = vld [vmem:[%s5512_s4 + $0x150] sm:$0xff]  ;;  %v1382_v33 = vld [vmem:[%s5512_s4 + $0x160] sm:$0xff]  ;;  %v1383_v51 = vld [vmem:[%s5512_s4 + $0x168] sm:$0xff] }
 0x1ff   :  { %v743_v1 = vadd.f32 %v742_v37, %v643_v42  ;;  %v2570_v3 = vadd.f32 %v2569_v4, %v2568_v43  ;;  %1182 = vmatprep.mubr.f32.mxu1 %v767_v47  ;;  %3351 = vmatmul.mubr.f32.vlgmr.msra.gmra.mrb[56].mxu0 %v767_v47  ;;  %v752_v63 = vpop.f32.mrb[36].mxu0  ;;  %v1363_v37 = vld [vmem:[%s5512_s4 + $0xc8] sm:$0xff] }
 0x200   :  { %1183 = vmatmul.mubr.f32.gmra.mrb[44].mxu1 %v766_v22  ;;  %3353 = vmatprep.mubr.msk.f32.mxu0 %vm3973_vm0, %v3974_v58  ;;  %v3258_v13 = vpop.f32.mrb[37].mxu0  ;;  %v4857_v22 = vpack.c.bf16 %v1345_v50, %v1344_v26  ;;  %v4866_v45 = vpack.c.bf16 %v1363_v37, %v1362_v14  ;;  %v1395_v50 = vld [vmem:[%s5512_s4 + $0x1c8] sm:$0xff]  ;;  %v1368_v37 = vld [vmem:[%s5512_s4 + $0xf0] sm:$0xff] }
 0x201   :  { %v768_v7 = vmax.f32 %v743_v1, 0.0  ;;  %v648_v32 = vadd.f32 %v2570_v3, %v4665_v61  ;;  %v2571_v8 = vpop.f32.mrb[22].mxu1  ;;  %3704 = vmatpush3.bf16.msra.mxu1 %v4780_v54  ;;  %3732 = vmatpush3.bf16.msra.mxu0 %v4788_v46  ;;  %v1349_v1 = vld [vmem:[%s5512_s4 + $0x58] sm:$0xff]  ;;  %v1351_v14 = vld [vmem:[%s5512_s4 + $0x68] sm:$0xff] }
 0x202   :  { %v2572_v11 = vpop.f32.mrb[23].mxu1  ;;  %3706 = vmatprep.subr.bf16.mxu1 %v4791_v53  ;;  %3734 = vmatprep.subr.bf16.mxu0 %v4797_v60  ;;  %v4909_v5 = vpack.c.bf16 %v1349_v1, %v1348_v19 }
 0x203   :  { %v748_v29 = vadd.f32 %v747_v34, %v648_v32  ;;  %v2573_v30 = vadd.f32 %v2572_v11, %v2571_v8  ;;  %1187 = vmatprep.mubr.f32.mxu1 %v768_v7  ;;  %3354 = vmatmul.mubr.f32.gmra.mrb[58].mxu0 %v768_v7  ;;  %v757_v16 = vpop.f32.mrb[38].mxu0  ;;  %v1377_v34 = vld [vmem:[%s5512_s4 + $0x138] sm:$0xff]  ;;  %v1367_v32 = vld [vmem:[%s5512_s4 + $0xe8] sm:$0xff]  ;;  %v1394_v8 = vld [vmem:[%s5512_s4 + $0x1c0] sm:$0xff] }
 0x204   :  { %1188 = vmatmul.mubr.f32.gmra.mrb[46].mxu1 %v767_v47  ;;  %3356 = vmatprep.mubr.msk.f32.mxu0 %vm3973_vm0, %v3974_v58  ;;  %v3261_v40 = vpop.f32.mrb[39].mxu0  ;;  %v4893_v4 = vpack.c.bf16 %v1377_v34, %v1376_v36  ;;  %v1350_v11 = vld [vmem:[%s5512_s4 + $0x60] sm:$0xff]  ;;  %v4939_v27 = vpack.c.bf16 %v1395_v50, %v1394_v8  ;;  %v1381_v36 = vld [vmem:[%s5512_s4 + $0x158] sm:$0xff] }
 0x205   :  { %v769_v18 = vmax.f32 %v748_v29, 0.0  ;;  %v2574_v21 = vpop.f32.mrb[24].mxu1  ;;  %v653_v49 = vadd.f32 %v2573_v30, %v4665_v61  ;;  %3708 = vmatpush3.bf16.msra.mxu1 %v4818_v41  ;;  %3736 = vmatpush3.bf16.msra.mxu0 %v4827_v56  ;;  %v4941_v12 = vpack.c.bf16 %v1351_v14, %v1350_v11  ;;  %v1378_v29 = vld [vmem:[%s5512_s4 + $0x140] sm:$0xff]  ;;  %v1379_v30 = vld [vmem:[%s5512_s4 + $0x148] sm:$0xff]  ;;  %v4964_v40 = vpack.c.bf16 %v1369_v17, %v1368_v37 }
 0x206   :  { %v2575_v44 = vpop.f32.mrb[25].mxu1  ;;  %3710 = vmatprep.subr.bf16.mxu1 %v4830_v2  ;;  %3738 = vmatprep.subr.bf16.mxu0 %v4836_v23  ;;  %v4986_v34 = vpack.c.bf16 %v1381_v36, %v1380_v10 }
 0x207   :  { %v2576_v39 = vadd.f32 %v2575_v44, %v2574_v21  ;;  %v753_v35 = vadd.f32 %v752_v63, %v653_v49  ;;  %1192 = vmatprep.mubr.f32.mxu1 %v769_v18  ;;  %3357 = vmatmul.mubr.f32.gmra.mrb[60].mxu0 %v769_v18  ;;  %v762_v38 = vpop.f32.mrb[40].mxu0  ;;  %v1352_v21 = vld [vmem:[%s5512_s4 + $0x70] sm:$0xff]  ;;  %v1353_v49 = vld [vmem:[%s5512_s4 + $0x78] sm:$0xff] }
 0x208   :  { %1193 = vmatmul.mubr.f32.gmra.mrb[48].mxu1 %v768_v7  ;;  %3359 = vmatprep.mubr.msk.f32.mxu0 %vm3973_vm0, %v3974_v58  ;;  %v3264_v42 = vpop.f32.mrb[41].mxu0  ;;  %v4977_v44 = vpack.c.bf16 %v1353_v49, %v1352_v21 }
 0x209   :  { %v770_v43 = vmax.f32 %v753_v35, 0.0  ;;  %v2577_v47 = vpop.f32.mrb[26].mxu1  ;;  %v658_v48 = vadd.f32 %v2576_v39, %v4665_v61  ;;  %3712 = vmatpush3.bf16.msra.mxu1 %v4857_v22  ;;  %3740 = vmatpush3.bf16.msra.mxu0 %v4863_v24  ;;  %v1398_v39 = vld [vmem:[%s5512_s4 + $0x1e0] sm:$0xff]  ;;  %v1399_v35 = vld [vmem:[%s5512_s4 + $0x1e8] sm:$0xff]  ;;  %v5006_v42 = vpack.c.bf16 %v1383_v51, %v1382_v33 }
 0x20a   :  { %v2578_v55 = vpop.f32.mrb[27].mxu1  ;;  %3714 = vmatprep.subr.bf16.mxu1 %v4866_v45  ;;  %3742 = vmatprep.subr.bf16.mxu0 %v4872_v31 }
 0x20b   :  { %v2579_v3 = vadd.f32 %v2578_v55, %v2577_v47  ;;  %v758_v63 = vadd.f32 %v757_v16, %v658_v48  ;;  %1197 = vmatprep.mubr.f32.mxu1 %v770_v43  ;;  %3360 = vmatmul.mubr.f32.gmra.mrb[62].mxu0 %v770_v43  ;;  %v4950_v16 = vpack.c.bf16 %v1379_v30, %v1378_v29  ;;  %v1384_v48 = vld [vmem:[%s5512_s4 + $0x170] sm:$0xff]  ;;  %v1385_v55 = vld [vmem:[%s5512_s4 + $0x178] sm:$0xff] }
 0x20c   :  { %1198 = vmatmul.mubr.f32.gmra.mrb[50].mxu1 %v769_v18  ;;  %3362 = vmatprep.mubr.msk.f32.mxu0 %vm3973_vm0, %v3974_v58  ;;  %v1397_v18 = vld [vmem:[%s5512_s4 + $0x1d8] sm:$0xff]  ;;  %v5024_v19 = vpack.c.bf16 %v1385_v55, %v1384_v48 }
 0x20d   :  { %v771_v20 = vmax.f32 %v758_v63, 0.0  ;;  %v663_v15 = vadd.f32 %v2579_v3, %v4665_v61  ;;  %3716 = vmatpush3.bf16.msra.mxu1 %v4890_v52  ;;  %3744 = vmatpush3.bf16.msra.mxu0 %v4893_v4  ;;  %v1366_v61 = vld [vmem:[%s5512_s4 + $0xe0] sm:$0xff]  ;;  %v4975_v0 = vpack.c.bf16 %v1397_v18, %v1396_v59 }
 0x20e   :  { %3718 = vmatprep.subr.bf16.mxu1 %v4896_v62  ;;  %v4928_v26 = vpack.c.bf16 %v1367_v32, %v1366_v61  ;;  %3746 = vmatprep.subr.bf16.mxu0 %v4939_v27  ;;  %v5032_v63 = vld [vmem:[%s5510_s7 + $0x2] ss:$0 sm:$0xff] }
 0x20f   :  { %v763_v13 = vadd.f32 %v762_v38, %v663_v15  ;;  %1202 = vmatprep.mubr.f32.mxu1 %v771_v20  ;;  %3363 = vmatmul.mubr.f32.gmra.mrb[64].mxu0 %v771_v20  ;;  %v4997_v38 = vpack.c.bf16 %v1399_v35, %v1398_v39 }
 0x210   :  { %1203 = vmatmul.mubr.f32.gmra.mrb[52].mxu1 %v770_v43  ;;  %3365 = vmatprep.mubr.msk.f32.mxu0 %vm3973_vm0, %v3974_v58  ;;  %v1400_v43 = vld [vmem:[%s5512_s4 + $0x1f0] sm:$0xff] }
 0x211   :  { %v772_v7 = vmax.f32 %v763_v13, 0.0  ;;  %3720 = vmatpush3.bf16.msra.mxu1 %v4909_v5  ;;  %3748 = vmatpush3.bf16.msra.mxu0 %v4950_v16 }
 0x212   :  { %3722 = vmatprep.subr.bf16.mxu1 %v4928_v26  ;;  %3750 = vmatprep.subr.bf16.mxu0 %v4975_v0 }
 0x213   :  { %1207 = vmatprep.mubr.f32.mxu1 %v772_v7  ;;  %3366 = vmatmul.mubr.f32.gmra.mrb[66].mxu0 %v772_v7 }
 0x214   :  { %1208 = vmatmul.mubr.f32.gmra.mrb[54].mxu1 %v771_v20  ;;  %3368 = vmatprep.mubr.msk.f32.mxu0 %vm3973_vm0, %v3974_v58 }
 0x215   :  { %3724 = vmatpush3.bf16.msra.mxu1 %v4941_v12  ;;  %3752 = vmatpush3.bf16.msra.mxu0 %v4986_v34 }
 0x216   :  { %3726 = vmatprep.subr.bf16.mxu1 %v4964_v40  ;;  %3754 = vmatprep.subr.bf16.mxu0 %v4997_v38 }
 0x217   :  { %3369 = vmatmul.mubr.f32.gmra.mrb[68].mxu0 %v3974_v58 }
 0x219   :  { %3728 = vmatpush3.bf16.msra.mxu1 %v4977_v44  ;;  %3756 = vmatpush3.bf16.msra.mxu0 %v5006_v42 }
 0x21a   :  { %3762 = vmatprep.subr.bf16.mxu1 %v4720_v28  ;;  %v1401_v28 = vld [vmem:[%s5512_s4 + $0x1f8] sm:$0xff] }
 0x21b   :  { %v5016_v47 = vpack.c.bf16 %v1401_v28, %v1400_v43 }
 0x21d   :  { %3758 = vmatprep.subr.bf16.mxu0 %v5016_v47 }
 0x21e   :  { %3760 = vmatpush3.bf16.msra.mxu0 %v5024_v19 }
 0x21f   :  { %3794 = vmatprep.subr.bf16.mxu0 %v4758_v25 }
 0x2af   :  { %v2635_v1 = vpop.f32.mrb[28].mxu1 }
 0x2b0   :  { %v2636_v3 = vpop.f32.mrb[29].mxu1 }
 0x2b1   :  { %v2637_v20 = vadd.f32 %v2636_v3, %v2635_v1 }
 0x2b2   :  { %v1008_v15 = vpop.f32.mrb[42].mxu0 }
 0x2b3   :  { %v909_v13 = vadd.f32 %v2637_v20, %v5032_v63  ;;  %v2638_v7 = vpop.f32.mrb[30].mxu1  ;;  %v3299_v61 = vpop.f32.mrb[43].mxu0 }
 0x2b4   :  { %v2639_v32 = vpop.f32.mrb[31].mxu1 }
 0x2b5   :  { %v1009_v8 = vadd.f32 %v1008_v15, %v909_v13  ;;  %v2640_v50 = vadd.f32 %v2639_v32, %v2638_v7 }
 0x2b6   :  { %v1013_v11 = vpop.f32.mrb[44].mxu0 }
 0x2b7   :  { %v1042_v14 = vmax.f32 %v1009_v8, 0.0  ;;  %v914_v25 = vadd.f32 %v2640_v50, %v5032_v63  ;;  %v2641_v29 = vpop.f32.mrb[32].mxu1  ;;  %v3302_v30 = vpop.f32.mrb[45].mxu0 }
 0x2b8   :  { %v2642_v37 = vpop.f32.mrb[33].mxu1 }
 0x2b9   :  { %v1014_v17 = vadd.f32 %v1013_v11, %v914_v25  ;;  %v2643_v59 = vadd.f32 %v2642_v37, %v2641_v29  ;;  %1470 = vmatprep.mubr.f32.mxu1 %v1042_v14 }
 0x2ba   :  { %v1018_v18 = vpop.f32.mrb[46].mxu0  ;;  %1471 = vmatmul.mubr.f32.vlgmr.msra.gmra.mrb[56].mxu1 %v3974_v58 }
 0x2bb   :  { %v1043_v21 = vmax.f32 %v1014_v17, 0.0  ;;  %v919_v49 = vadd.f32 %v2643_v59, %v5032_v63  ;;  %3764 = vmatpush3.bf16.msra.mxu1 %v4744_v57  ;;  %v2644_v10 = vpop.f32.mrb[34].mxu1  ;;  %v3305_v36 = vpop.f32.mrb[47].mxu0  ;;  %v1921_v59 = vld [vmem:[%s5513_s5] sm:$0xff] }
 0x2bc   :  { %v2645_v39 = vpop.f32.mrb[35].mxu1  ;;  %3766 = vmatprep.subr.bf16.mxu1 %v4753_v9 }
 0x2bd   :  { %v1019_v35 = vadd.f32 %v1018_v18, %v919_v49  ;;  %v2646_v33 = vadd.f32 %v2645_v39, %v2644_v10  ;;  %1475 = vmatprep.mubr.f32.mxu1 %v1043_v21 }
 0x2be   :  { %v1023_v51 = vpop.f32.mrb[48].mxu0  ;;  %1476 = vmatmul.mubr.f32.gmra.mrb[58].mxu1 %v1042_v14 }
 0x2bf   :  { %v1044_v43 = vmax.f32 %v1019_v35, 0.0  ;;  %v924_v28 = vadd.f32 %v2646_v33, %v5032_v63  ;;  %3768 = vmatpush3.bf16.msra.mxu1 %v4780_v54  ;;  %v2647_v48 = vpop.f32.mrb[36].mxu1  ;;  %v3308_v55 = vpop.f32.mrb[49].mxu0  ;;  %v1939_v33 = vld [vmem:[%s5513_s5 + $0x90] sm:$0xff] }
 0x2c0   :  { %v2648_v1 = vpop.f32.mrb[37].mxu1  ;;  %3770 = vmatprep.subr.bf16.mxu1 %v4791_v53 }
 0x2c1   :  { %v1024_v57 = vadd.f32 %v1023_v51, %v924_v28  ;;  %v2649_v3 = vadd.f32 %v2648_v1, %v2647_v48  ;;  %1480 = vmatprep.mubr.f32.mxu1 %v1044_v43  ;;  %1570 = vmatprep.mubr.f32.mxu0 %v1044_v43 }
 0x2c2   :  { %v1028_v9 = vpop.f32.mrb[50].mxu0  ;;  %1481 = vmatmul.mubr.f32.gmra.mrb[60].mxu1 %v1043_v21  ;;  %1571 = vmatmul.mubr.f32.vlgmr.msra.gmra.mrb[70].mxu0 %v1043_v21 }
 0x2c3   :  { %v1045_v20 = vmax.f32 %v1024_v57, 0.0  ;;  %v929_v15 = vadd.f32 %v2649_v3, %v5032_v63  ;;  %3772 = vmatpush3.bf16.msra.mxu1 %v4818_v41  ;;  %3796 = vmatpush3.bf16.msra.mxu0 %v4788_v46  ;;  %v2650_v54 = vpop.f32.mrb[38].mxu1  ;;  %v3311_v13 = vpop.f32.mrb[51].mxu0  ;;  %v1941_v3 = vld [vmem:[%s5513_s5 + $0xa0] sm:$0xff] }
 0x2c4   :  { %v2651_v7 = vpop.f32.mrb[39].mxu1  ;;  %3774 = vmatprep.subr.bf16.mxu1 %v4830_v2  ;;  %3798 = vmatprep.subr.bf16.mxu0 %v4797_v60 }
 0x2c5   :  { %v1029_v53 = vadd.f32 %v1028_v9, %v929_v15  ;;  %v2652_v61 = vadd.f32 %v2651_v7, %v2650_v54  ;;  %1485 = vmatprep.mubr.f32.mxu1 %v1045_v20  ;;  %1575 = vmatprep.mubr.f32.mxu0 %v1045_v20  ;;  %v1942_v9 = vld [vmem:[%s5513_s5 + $0xa8] sm:$0xff] }
 0x2c6   :  { %v1033_v32 = vpop.f32.mrb[52].mxu0  ;;  %1486 = vmatmul.mubr.f32.gmra.mrb[62].mxu1 %v1044_v43  ;;  %1576 = vmatmul.mubr.f32.gmra.mrb[72].mxu0 %v1044_v43  ;;  %v3833_v7 = vpack.c.bf16 %v1942_v9, %v1941_v3  ;;  %v1932_v3 = vld [vmem:[%s5513_s5 + $0x58] sm:$0xff] }
 0x2c7   :  { %v1046_v8 = vmax.f32 %v1029_v53, 0.0  ;;  %v934_v50 = vadd.f32 %v2652_v61, %v5032_v63  ;;  %3776 = vmatpush3.bf16.msra.mxu1 %v4857_v22  ;;  %3800 = vmatpush3.bf16.msra.mxu0 %v4827_v56  ;;  %v2653_v46 = vpop.f32.mrb[40].mxu1  ;;  %v3314_v41 = vpop.f32.mrb[53].mxu0 }
 0x2c8   :  { %v2654_v11 = vpop.f32.mrb[41].mxu1  ;;  %3778 = vmatprep.subr.bf16.mxu1 %v4866_v45  ;;  %3802 = vmatprep.subr.bf16.mxu0 %v4836_v23 }
 0x2c9   :  { %v1034_v60 = vadd.f32 %v1033_v32, %v934_v50  ;;  %v2655_v2 = vadd.f32 %v2654_v11, %v2653_v46  ;;  %1490 = vmatprep.mubr.f32.mxu1 %v1046_v8  ;;  %1580 = vmatprep.mubr.f32.mxu0 %v1046_v8 }
 0x2ca   :  { %1491 = vmatmul.mubr.f32.gmra.mrb[64].mxu1 %v1045_v20  ;;  %1581 = vmatmul.mubr.f32.gmra.mrb[74].mxu0 %v1045_v20 }
 0x2cb   :  { %v1047_v14 = vmax.f32 %v1034_v60, 0.0  ;;  %3780 = vmatpush3.bf16.msra.mxu1 %v4890_v52  ;;  %3804 = vmatpush3.bf16.msra.mxu0 %v4863_v24  ;;  %v939_v56 = vadd.f32 %v2655_v2, %v5032_v63 }
 0x2cc   :  { %3782 = vmatprep.subr.bf16.mxu1 %v4896_v62  ;;  %3806 = vmatprep.subr.bf16.mxu0 %v4872_v31 }
 0x2cd   :  { %1495 = vmatprep.mubr.f32.mxu1 %v1047_v14  ;;  %1585 = vmatprep.mubr.f32.mxu0 %v1047_v14 }
 0x2ce   :  { %v1038_v23 = vpop.f32.mrb[54].mxu0  ;;  %1496 = vmatmul.mubr.f32.gmra.mrb[66].mxu1 %v1046_v8  ;;  %1586 = vmatmul.mubr.f32.gmra.mrb[76].mxu0 %v1046_v8 }
 0x2cf   :  { %v1039_v22 = vadd.f32 %v1038_v23, %v939_v56  ;;  %v3317_v45 = vpop.f32.mrb[55].mxu0  ;;  %v2711_v25 = vpop.f32.mrb[42].mxu1  ;;  %3784 = vmatpush3.bf16.msra.mxu1 %v4909_v5  ;;  %3808 = vmatpush3.bf16.msra.mxu0 %v4893_v4  ;;  %v1937_v4 = vld [vmem:[%s5513_s5 + $0x80] sm:$0xff] }
 0x2d0   :  { %v2712_v52 = vpop.f32.mrb[43].mxu1  ;;  %3786 = vmatprep.subr.bf16.mxu1 %v4928_v26  ;;  %3810 = vmatprep.subr.bf16.mxu0 %v4939_v27  ;;  %v1938_v26 = vld [vmem:[%s5513_s5 + $0x88] sm:$0xff] }
 0x2d1   :  { %v1048_v24 = vmax.f32 %v1039_v22, 0.0  ;;  %v2713_v62 = vadd.f32 %v2712_v52, %v2711_v25  ;;  %v3825_v36 = vpack.c.bf16 %v1938_v26, %v1937_v4 }
 0x2d2   :  { %v1279_v31 = vpop.f32.mrb[56].mxu0 }
 0x2d3   :  { %v1180_v29 = vadd.f32 %v2713_v62, %v5032_v63  ;;  %v2714_v30 = vpop.f32.mrb[44].mxu1  ;;  %v3352_v37 = vpop.f32.mrb[57].mxu0  ;;  %1500 = vmatprep.mubr.f32.mxu1 %v1048_v24  ;;  %1590 = vmatprep.mubr.f32.mxu0 %v1048_v24 }
 0x2d4   :  { %3788 = vmatpush3.bf16.msra.mxu1 %v4941_v12  ;;  %3812 = vmatpush3.bf16.msra.mxu0 %v4950_v16  ;;  %v2715_v5 = vpop.f32.mrb[45].mxu1  ;;  %v1922_v12 = vld [vmem:[%s5513_s5 + $0x8] sm:$0xff] }
 0x2d5   :  { %v1280_v27 = vadd.f32 %v1279_v31, %v1180_v29  ;;  %v2716_v17 = vadd.f32 %v2715_v5, %v2714_v30  ;;  %1501 = vmatmul.mubr.f32.gmra.mrb[68].mxu1 %v1047_v14  ;;  %1591 = vmatmul.mubr.f32.gmra.mrb[78].mxu0 %v1047_v14  ;;  %v3827_v35 = vpack.c.bf16 %v1922_v12, %v1921_v59  ;;  %v1943_v59 = vld [vmem:[%s5513_s5 + $0xb0] sm:$0xff]  ;;  %v1944_v12 = vld [vmem:[%s5513_s5 + $0xb8] sm:$0xff] }
 0x2d6   :  { %v1284_v16 = vpop.f32.mrb[58].mxu0  ;;  %3790 = vmatprep.subr.bf16.mxu1 %v4964_v40  ;;  %3814 = vmatprep.subr.bf16.mxu0 %v4975_v0  ;;  %v1940_v40 = vld [vmem:[%s5513_s5 + $0x98] sm:$0xff] }
 0x2d7   :  { %v1313_v18 = vmax.f32 %v1280_v27, 0.0  ;;  %v1185_v21 = vadd.f32 %v2716_v17, %v5032_v63  ;;  %v2717_v49 = vpop.f32.mrb[46].mxu1  ;;  %v3355_v10 = vpop.f32.mrb[59].mxu0  ;;  %v3829_v57 = vpack.c.bf16 %v1940_v40, %v1939_v33  ;;  %v1926_v27 = vld [vmem:[%s5513_s5 + $0x28] sm:$0xff] }
 0x2d8   :  { %3792 = vmatpush3.bf16.msra.mxu1 %v4977_v44  ;;  %3816 = vmatpush3.bf16.msra.mxu0 %v4986_v34  ;;  %v2718_v39 = vpop.f32.mrb[47].mxu1  ;;  %v1923_v44 = vld [vmem:[%s5513_s5 + $0x10] sm:$0xff]  ;;  %v1924_v34 = vld [vmem:[%s5513_s5 + $0x18] sm:$0xff]  ;;  %v1945_v10 = vld [vmem:[%s5513_s5 + $0xc0] sm:$0xff] }
 0x2d9   :  { %v1285_v0 = vadd.f32 %v1284_v16, %v1185_v21  ;;  %v2719_v51 = vadd.f32 %v2718_v39, %v2717_v49  ;;  %1595 = vmatprep.mubr.f32.mxu0 %v1313_v18  ;;  %1764 = vmatprep.mubr.f32.mxu1 %v1313_v18  ;;  %v3837_v16 = vpack.c.bf16 %v1944_v12, %v1943_v59  ;;  %v1928_v21 = vld [vmem:[%s5513_s5 + $0x38] sm:$0xff]  ;;  %v1930_v33 = vld [vmem:[%s5513_s5 + $0x48] sm:$0xff]  ;;  %v1979_v12 = vld [vmem:[%s5513_s5 + $0x1d0] sm:$0xff] }
 0x2da   :  { %v1289_v43 = vpop.f32.mrb[60].mxu0  ;;  %1596 = vmatmul.mubr.f32.gmra.mrb[80].mxu0 %v1048_v24  ;;  %3818 = vmatprep.subr.bf16.mxu0 %v4997_v38  ;;  %v3831_v38 = vpack.c.bf16 %v1924_v34, %v1923_v44  ;;  %v1953_v34 = vld [vmem:[%s5513_s5 + $0x100] sm:$0xff] }
 0x2db   :  { %v1314_v28 = vmax.f32 %v1285_v0, 0.0  ;;  %v1190_v48 = vadd.f32 %v2719_v51, %v5032_v63  ;;  %1765 = vmatmul.mubr.f32.vlgmr.msra.gmra.mrb[70].mxu1 %v1048_v24  ;;  %v2720_v55 = vpop.f32.mrb[48].mxu1  ;;  %v3358_v1 = vpop.f32.mrb[61].mxu0  ;;  %3826 = vmatprep.subr.bf16.mxu1 %v3825_v36  ;;  %v1946_v36 = vld [vmem:[%s5513_s5 + $0xc8] sm:$0xff]  ;;  %v1969_v0 = vld [vmem:[%s5513_s5 + $0x180] sm:$0xff] }
 0x2dc   :  { %3820 = vmatpush3.bf16.msra.mxu0 %v5006_v42  ;;  %v2721_v20 = vpop.f32.mrb[49].mxu1  ;;  %3828 = vmatpush3.bf16.msra.mxu1 %v3827_v35  ;;  %v3841_v39 = vpack.c.bf16 %v1946_v36, %v1945_v10  ;;  %v1929_v35 = vld [vmem:[%s5513_s5 + $0x40] sm:$0xff]  ;;  %v1970_v51 = vld [vmem:[%s5513_s5 + $0x188] sm:$0xff] }
 0x2dd   :  { %v1290_v15 = vadd.f32 %v1289_v43, %v1190_v48  ;;  %v2722_v54 = vadd.f32 %v2721_v20, %v2720_v55  ;;  %1600 = vmatprep.mubr.f32.mxu0 %v1314_v28  ;;  %1769 = vmatprep.mubr.f32.mxu1 %v1314_v28  ;;  %v3843_v40 = vpack.c.bf16 %v1930_v33, %v1929_v35  ;;  %v1954_v43 = vld [vmem:[%s5513_s5 + $0x108] sm:$0xff]  ;;  %v1947_v48 = vld [vmem:[%s5513_s5 + $0xd0] sm:$0xff]  ;;  %v1948_v55 = vld [vmem:[%s5513_s5 + $0xd8] sm:$0xff] }
 0x2de   :  { %v1294_v13 = vpop.f32.mrb[62].mxu0  ;;  %1601 = vmatmul.mubr.f32.gmra.mrb[82].mxu0 %v1313_v18  ;;  %3822 = vmatprep.subr.bf16.mxu0 %v5016_v47  ;;  %v3857_v44 = vpack.c.bf16 %v1970_v51, %v1969_v0  ;;  %v3845_v1 = vpack.c.bf16 %v1948_v55, %v1947_v48  ;;  %v1971_v20 = vld [vmem:[%s5513_s5 + $0x190] sm:$0xff]  ;;  %v1981_v36 = vld [vmem:[%s5513_s5 + $0x1e0] sm:$0xff] }
 0x2df   :  { %v1315_v53 = vmax.f32 %v1290_v15, 0.0  ;;  %v1195_v61 = vadd.f32 %v2722_v54, %v5032_v63  ;;  %1770 = vmatmul.mubr.f32.gmra.mrb[72].mxu1 %v1313_v18  ;;  %v2723_v32 = vpop.f32.mrb[50].mxu1  ;;  %v3361_v8 = vpop.f32.mrb[63].mxu0  ;;  %3830 = vmatprep.subr.bf16.mxu1 %v3829_v57  ;;  %v1927_v18 = vld [vmem:[%s5513_s5 + $0x30] sm:$0xff]  ;;  %v1965_v33 = vld [vmem:[%s5513_s5 + $0x160] sm:$0xff] }
 0x2e0   :  { %3824 = vmatpush3.bf16.msra.mxu0 %v5024_v19  ;;  %v2724_v42 = vpop.f32.mrb[51].mxu1  ;;  %3832 = vmatpush3.bf16.msra.mxu1 %v3831_v38  ;;  %v3839_v49 = vpack.c.bf16 %v1928_v21, %v1927_v18  ;;  %v1931_v57 = vld [vmem:[%s5513_s5 + $0x50] sm:$0xff]  ;;  %v1972_v38 = vld [vmem:[%s5513_s5 + $0x198] sm:$0xff]  ;;  %v1933_v8 = vld [vmem:[%s5513_s5 + $0x60] sm:$0xff] }
 0x2e1   :  { %v1295_v50 = vadd.f32 %v1294_v13, %v1195_v61  ;;  %v2725_v46 = vadd.f32 %v2724_v42, %v2723_v32  ;;  %1774 = vmatprep.mubr.f32.mxu1 %v1315_v53  ;;  %1864 = vmatprep.mubr.f32.mxu0 %v1315_v53  ;;  %v3847_v9 = vpack.c.bf16 %v1932_v3, %v1931_v57  ;;  %v1955_v54 = vld [vmem:[%s5513_s5 + $0x110] sm:$0xff]  ;;  %v1956_v13 = vld [vmem:[%s5513_s5 + $0x118] sm:$0xff]  ;;  %v1950_v61 = vld [vmem:[%s5513_s5 + $0xe8] sm:$0xff] }
 0x2e2   :  { %v1299_v41 = vpop.f32.mrb[64].mxu0  ;;  %3834 = vmatprep.subr.bf16.mxu1 %v3833_v7  ;;  %3858 = vmatprep.subr.bf16.mxu0 %v3857_v44  ;;  %v3861_v15 = vpack.c.bf16 %v1972_v38, %v1971_v20  ;;  %v3863_v7 = vpack.c.bf16 %v1956_v13, %v1955_v54  ;;  %v1934_v42 = vld [vmem:[%s5513_s5 + $0x68] sm:$0xff]  ;;  %v1963_v21 = vld [vmem:[%s5513_s5 + $0x150] sm:$0xff]  ;;  %v1984_v44 = vld [vmem:[%s5513_s5 + $0x1f8] sm:$0xff] }
 0x2e3   :  { %v1316_v11 = vmax.f32 %v1295_v50, 0.0  ;;  %v1200_v47 = vadd.f32 %v2725_v46, %v5032_v63  ;;  %1775 = vmatmul.mubr.f32.gmra.mrb[74].mxu1 %v1314_v28  ;;  %1865 = vmatmul.mubr.f32.vlgmr.msra.gmra.mrb[84].mxu0 %v1314_v28  ;;  %v2726_v60 = vpop.f32.mrb[52].mxu1  ;;  %v3364_v2 = vpop.f32.mrb[65].mxu0  ;;  %v3859_v28 = vpack.c.bf16 %v1954_v43, %v1953_v34  ;;  %v3851_v50 = vpack.c.bf16 %v1934_v42, %v1933_v8  ;;  %v1973_v46 = vld [vmem:[%s5513_s5 + $0x1a0] sm:$0xff]  ;;  %v1983_v51 = vld [vmem:[%s5513_s5 + $0x1f0] sm:$0xff] }
 0x2e4   :  { %v2727_v14 = vpop.f32.mrb[53].mxu1  ;;  %v3885_v34 = vpack.c.bf16 %v1984_v44, %v1983_v51  ;;  %v1967_v43 = vld [vmem:[%s5513_s5 + $0x170] sm:$0xff] }
 0x2e5   :  { %v1300_v56 = vadd.f32 %v1299_v41, %v1200_v47  ;;  %v2728_v23 = vadd.f32 %v2727_v14, %v2726_v60  ;;  %1779 = vmatprep.mubr.f32.mxu1 %v1316_v11  ;;  %1869 = vmatprep.mubr.f32.mxu0 %v1316_v11  ;;  %v1974_v41 = vld [vmem:[%s5513_s5 + $0x1a8] sm:$0xff]  ;;  %v1957_v47 = vld [vmem:[%s5513_s5 + $0x120] sm:$0xff]  ;;  %v1951_v14 = vld [vmem:[%s5513_s5 + $0xf0] sm:$0xff] }
 0x2e6   :  { %v1304_v19 = vpop.f32.mrb[66].mxu0  ;;  %3860 = vmatpush3.bf16.msra.mxu0 %v3859_v28  ;;  %v1958_v60 = vld [vmem:[%s5513_s5 + $0x128] sm:$0xff]  ;;  %v1968_v28 = vld [vmem:[%s5513_s5 + $0x178] sm:$0xff] }
 0x2e7   :  { %v1317_v22 = vmax.f32 %v1300_v56, 0.0  ;;  %v1205_v45 = vadd.f32 %v2728_v23, %v5032_v63  ;;  %1780 = vmatmul.mubr.f32.gmra.mrb[76].mxu1 %v1315_v53  ;;  %1870 = vmatmul.mubr.f32.gmra.mrb[86].mxu0 %v1315_v53  ;;  %v2729_v25 = vpop.f32.mrb[54].mxu1  ;;  %v3367_v52 = vpop.f32.mrb[67].mxu0  ;;  %v1949_v53 = vld [vmem:[%s5513_s5 + $0xe0] sm:$0xff]  ;;  %v3867_v2 = vpack.c.bf16 %v1958_v60, %v1957_v47  ;;  %v1952_v56 = vld [vmem:[%s5513_s5 + $0xf8] sm:$0xff]  ;;  %v3887_v48 = vpack.c.bf16 %v1968_v28, %v1967_v43 }
 0x2e8   :  { %v2730_v24 = vpop.f32.mrb[55].mxu1  ;;  %3862 = vmatprep.subr.bf16.mxu0 %v3861_v15  ;;  %v3849_v32 = vpack.c.bf16 %v1950_v61, %v1949_v53  ;;  %v3853_v23 = vpack.c.bf16 %v1952_v56, %v1951_v14  ;;  %v1976_v52 = vld [vmem:[%s5513_s5 + $0x1b8] sm:$0xff] }
 0x2e9   :  { %v1305_v62 = vadd.f32 %v1304_v19, %v1205_v45  ;;  %v2731_v31 = vadd.f32 %v2730_v24, %v2729_v25  ;;  %1784 = vmatprep.mubr.f32.mxu1 %v1317_v22  ;;  %1874 = vmatprep.mubr.f32.mxu0 %v1317_v22  ;;  %v1935_v19 = vld [vmem:[%s5513_s5 + $0x70] sm:$0xff]  ;;  %v1992_v43 = vld [vmem:[%s5513_s5 + $0x238] sm:$0xff] }
 0x2ea   :  { %v1309_v29 = vpop.f32.mrb[68].mxu0  ;;  %3864 = vmatpush3.bf16.msra.mxu0 %v3863_v7  ;;  %v1975_v25 = vld [vmem:[%s5513_s5 + $0x1b0] sm:$0xff] }
 0x2eb   :  { %v1318_v30 = vmax.f32 %v1305_v62, 0.0  ;;  %1785 = vmatmul.mubr.f32.gmra.mrb[78].mxu1 %v1316_v11  ;;  %1875 = vmatmul.mubr.f32.gmra.mrb[88].mxu0 %v1316_v11  ;;  %v1210_v37 = vadd.f32 %v2731_v31, %v5032_v63  ;;  %v3370_v5 = vpop.f32.mrb[69].mxu0  ;;  %v1925_v63 = vld [vmem:[%s5513_s5 + $0x20] sm:$0xff]  ;;  %v3865_v11 = vpack.c.bf16 %v1974_v41, %v1973_v46  ;;  %v3869_v24 = vpack.c.bf16 %v1976_v52, %v1975_v25  ;;  %v1959_v62 = vld [vmem:[%s5513_s5 + $0x130] sm:$0xff]  ;;  %v1960_v31 = vld [vmem:[%s5513_s5 + $0x138] sm:$0xff] }
 0x2ec   :  { %v3835_v17 = vpack.c.bf16 %v1926_v27, %v1925_v63  ;;  %v2001_v63 = vld [vmem:[%s5513_s5 + $0x280] sm:$0xff]  ;;  %v2003_v52 = vld [vmem:[%s5513_s5 + $0x290] sm:$0xff] }
 0x2ed   :  { %v1310_v4 = vadd.f32 %v1309_v29, %v1210_v37  ;;  %1789 = vmatprep.mubr.f32.mxu1 %v1318_v30  ;;  %1879 = vmatprep.mubr.f32.mxu0 %v1318_v30  ;;  %v3871_v29 = vpack.c.bf16 %v1960_v31, %v1959_v62  ;;  %v1978_v37 = vld [vmem:[%s5513_s5 + $0x1c8] sm:$0xff] }
 0x2ee   :  { %3836 = vmatpush3.bf16.msra.mxu1 %v3835_v17  ;;  %3866 = vmatprep.subr.bf16.mxu0 %v3865_v11  ;;  %v2002_v17 = vld [vmem:[%s5513_s5 + $0x288] sm:$0xff] }
 0x2ef   :  { %v1319_v26 = vmax.f32 %v1310_v4, 0.0  ;;  %1790 = vmatmul.mubr.f32.gmra.mrb[80].mxu1 %v1317_v22  ;;  %1880 = vmatmul.mubr.f32.gmra.mrb[90].mxu0 %v1317_v22  ;;  %v1936_v22 = vld [vmem:[%s5513_s5 + $0x78] sm:$0xff]  ;;  %v1961_v4 = vld [vmem:[%s5513_s5 + $0x140] sm:$0xff]  ;;  %v3889_v59 = vpack.c.bf16 %v2002_v17, %v2001_v63 }
 0x2f0   :  { %3838 = vmatprep.subr.bf16.mxu1 %v3837_v16  ;;  %3868 = vmatpush3.bf16.msra.mxu0 %v3867_v2  ;;  %v3855_v45 = vpack.c.bf16 %v1936_v22, %v1935_v19  ;;  %v1980_v16 = vld [vmem:[%s5513_s5 + $0x1d8] sm:$0xff]  ;;  %v1986_v19 = vld [vmem:[%s5513_s5 + $0x208] sm:$0xff]  ;;  %v2005_v63 = vld [vmem:[%s5513_s5 + $0x2a0] sm:$0xff] }
 0x2f1   :  { %1794 = vmatprep.mubr.f32.mxu1 %v1319_v26  ;;  %1884 = vmatprep.mubr.f32.mxu0 %v1319_v26  ;;  %v3877_v18 = vpack.c.bf16 %v1980_v16, %v1979_v12 }
 0x2f2   :  { %3840 = vmatpush3.bf16.msra.mxu1 %v3839_v49  ;;  %3870 = vmatprep.subr.bf16.mxu0 %v3869_v24  ;;  %v1964_v49 = vld [vmem:[%s5513_s5 + $0x158] sm:$0xff] }
 0x2f3   :  { %1795 = vmatmul.mubr.f32.gmra.mrb[82].mxu1 %v1318_v30  ;;  %1885 = vmatmul.mubr.f32.gmra.mrb[92].mxu0 %v1318_v30  ;;  %v1977_v30 = vld [vmem:[%s5513_s5 + $0x1c0] sm:$0xff]  ;;  %v3879_v10 = vpack.c.bf16 %v1964_v49, %v1963_v21  ;;  %v2004_v24 = vld [vmem:[%s5513_s5 + $0x298] sm:$0xff]  ;;  %v1990_v21 = vld [vmem:[%s5513_s5 + $0x228] sm:$0xff] }
 0x2f4   :  { %1889 = vmatprep.mubr.f32.mxu0 %v3974_v58  ;;  %3842 = vmatprep.subr.bf16.mxu1 %v3841_v39  ;;  %v3873_v5 = vpack.c.bf16 %v1978_v37, %v1977_v30  ;;  %v1982_v39 = vld [vmem:[%s5513_s5 + $0x1e8] sm:$0xff] }
 0x2f5   :  { %3872 = vmatpush3.bf16.msra.mxu0 %v3871_v29  ;;  %v3881_v35 = vpack.c.bf16 %v1982_v39, %v1981_v36  ;;  %v2007_v36 = vld [vmem:[%s5513_s5 + $0x2b0] sm:$0xff]  ;;  %v2008_v39 = vld [vmem:[%s5513_s5 + $0x2b8] sm:$0xff] }
 0x2f6   :  { %3844 = vmatpush3.bf16.msra.mxu1 %v3843_v40  ;;  %3874 = vmatprep.subr.bf16.mxu0 %v3873_v5  ;;  %v1966_v40 = vld [vmem:[%s5513_s5 + $0x168] sm:$0xff]  ;;  %v3893_v5 = vpack.c.bf16 %v2004_v24, %v2003_v52  ;;  %v3901_v44 = vpack.c.bf16 %v2008_v39, %v2007_v36 }
 0x2f7   :  { %1890 = vmatmul.mubr.f32.gmra.mrb[94].mxu0 %v1319_v26  ;;  %3846 = vmatprep.subr.bf16.mxu1 %v3845_v1  ;;  %v1962_v26 = vld [vmem:[%s5513_s5 + $0x148] sm:$0xff]  ;;  %v3883_v0 = vpack.c.bf16 %v1966_v40, %v1965_v33 }
 0x2f8   :  { %1894 = vmatprep.mubr.f32.mxu0 %v3974_v58  ;;  %v3875_v27 = vpack.c.bf16 %v1962_v26, %v1961_v4  ;;  %v1987_v4 = vld [vmem:[%s5513_s5 + $0x210] sm:$0xff]  ;;  %v1988_v26 = vld [vmem:[%s5513_s5 + $0x218] sm:$0xff] }
 0x2f9   :  { %v3895_v17 = vpack.c.bf16 %v1988_v26, %v1987_v4  ;;  %v1998_v26 = vld [vmem:[%s5513_s5 + $0x268] sm:$0xff] }
 0x2fa   :  { %3848 = vmatpush3.bf16.msra.mxu1 %v3847_v9  ;;  %3876 = vmatpush3.bf16.msra.mxu0 %v3875_v27  ;;  %v5284_v9 = vld [vmem:[%s5510_s7 + $0x3] ss:$0 sm:$0xff]  ;;  %v2006_v27 = vld [vmem:[%s5513_s5 + $0x2a8] sm:$0xff] }
 0x2fb   :  { %1895 = vmatmul.mubr.f32.gmra.mrb[96].mxu0 %v3974_v58  ;;  %3850 = vmatprep.subr.bf16.mxu1 %v3849_v32  ;;  %v3897_v16 = vpack.c.bf16 %v2006_v27, %v2005_v63  ;;  %v2015_v63 = vld [vmem:[%s5513_s5 + $0x2f0] sm:$0xff]  ;;  %v2016_v27 = vld [vmem:[%s5513_s5 + $0x2f8] sm:$0xff] }
 0x2fc   :  { %3878 = vmatprep.subr.bf16.mxu0 %v3877_v18  ;;  %v1989_v18 = vld [vmem:[%s5513_s5 + $0x220] sm:$0xff] }
 0x2fe   :  { %3852 = vmatpush3.bf16.msra.mxu1 %v3851_v50  ;;  %3880 = vmatpush3.bf16.msra.mxu0 %v3879_v10 }
 0x2ff   :  { %3854 = vmatprep.subr.bf16.mxu1 %v3853_v23  ;;  %3882 = vmatprep.subr.bf16.mxu0 %v3881_v35  ;;  %v1985_v23 = vld [vmem:[%s5513_s5 + $0x200] sm:$0xff] }
 0x300   :  { %v3891_v30 = vpack.c.bf16 %v1986_v19, %v1985_v23  ;;  %v2013_v23 = vld [vmem:[%s5513_s5 + $0x2e0] sm:$0xff]  ;;  %v2014_v19 = vld [vmem:[%s5513_s5 + $0x2e8] sm:$0xff] }
 0x301   :  { %v3913_v4 = vpack.c.bf16 %v2014_v19, %v2013_v23 }
 0x302   :  { %3856 = vmatpush3.bf16.msra.mxu1 %v3855_v45  ;;  %3884 = vmatpush3.bf16.msra.mxu0 %v3883_v0  ;;  %v3899_v0 = vpack.c.bf16 %v1990_v21, %v1989_v18  ;;  %v2021_v21 = vld [vmem:[%s5513_s5 + $0x320] sm:$0xff] }
 0x303   :  { %3890 = vmatprep.subr.bf16.mxu1 %v3889_v59  ;;  %3886 = vmatprep.subr.bf16.mxu0 %v3885_v34  ;;  %v1991_v34 = vld [vmem:[%s5513_s5 + $0x230] sm:$0xff] }
 0x306   :  { %3888 = vmatpush3.bf16.msra.mxu0 %v3887_v48  ;;  %v2009_v48 = vld [vmem:[%s5513_s5 + $0x2c0] sm:$0xff] }
 0x307   :  { %3921 = vmatprep.subr.bf16.mxu0 %v3972_v6 }
 0x38d   :  { %v2787_v55 = vpop.f32.mrb[56].mxu1 }
 0x38e   :  { %v2788_v1 = vpop.f32.mrb[57].mxu1 }
 0x38f   :  { %v2789_v57 = vadd.f32 %v2788_v1, %v2787_v55  ;;  %v2010_v55 = vld [vmem:[%s5513_s5 + $0x2c8] sm:$0xff] }
 0x391   :  { %v2790_v3 = vpop.f32.mrb[58].mxu1  ;;  %v1473_v38 = vadd.f32 %v2789_v57, %v5284_v9 }
 0x392   :  { %v2791_v20 = vpop.f32.mrb[59].mxu1 }
 0x393   :  { %v3903_v20 = vpack.c.bf16 %v1992_v43, %v1991_v34 }
 0x395   :  { %v2793_v15 = vpop.f32.mrb[60].mxu1  ;;  %v2840_v54 = vpop.f32.mrb[70].mxu0 }
 0x396   :  { %v2794_v13 = vpop.f32.mrb[61].mxu1  ;;  %v2841_v7 = vpop.f32.mrb[71].mxu0 }
 0x397   :  { %v2795_v53 = vadd.f32 %v2794_v13, %v2793_v15  ;;  %v2842_v61 = vadd.f32 %v2841_v7, %v2840_v54  ;;  %v1993_v15 = vld [vmem:[%s5513_s5 + $0x240] sm:$0xff]  ;;  %v1994_v54 = vld [vmem:[%s5513_s5 + $0x248] sm:$0xff]  ;;  %v2011_v7 = vld [vmem:[%s5513_s5 + $0x2d0] sm:$0xff] }
 0x399   :  { %v1573_v32 = vadd.f32 %v2842_v61, %v1473_v38  ;;  %v2796_v8 = vpop.f32.mrb[62].mxu1  ;;  %v2843_v42 = vpop.f32.mrb[72].mxu0  ;;  %v1483_v2 = vadd.f32 %v2795_v53, %v5284_v9  ;;  %v3905_v38 = vpack.c.bf16 %v2010_v55, %v2009_v48  ;;  %v2012_v53 = vld [vmem:[%s5513_s5 + $0x2d8] sm:$0xff] }
 0x39a   :  { %v2797_v50 = vpop.f32.mrb[63].mxu1  ;;  %v2844_v46 = vpop.f32.mrb[73].mxu0 }
 0x39b   :  { %v1606_v37 = vmax.f32 %v1573_v32, 0.0  ;;  %v2017_v46 = vld [vmem:[%s5513_s5 + $0x300] sm:$0xff] }
 0x39d   :  { %v2799_v41 = vpop.f32.mrb[64].mxu1  ;;  %v2846_v11 = vpop.f32.mrb[74].mxu0 }
 0x39e   :  { %v2800_v47 = vpop.f32.mrb[65].mxu1  ;;  %v2847_v60 = vpop.f32.mrb[75].mxu0 }
 0x39f   :  { %v2801_v14 = vadd.f32 %v2800_v47, %v2799_v41  ;;  %v2848_v56 = vadd.f32 %v2847_v60, %v2846_v11  ;;  %v3907_v41 = vpack.c.bf16 %v1994_v54, %v1993_v15  ;;  %v2018_v47 = vld [vmem:[%s5513_s5 + $0x308] sm:$0xff]  ;;  %v3909_v60 = vpack.c.bf16 %v2012_v53, %v2011_v7 }
 0x3a1   :  { %v1583_v22 = vadd.f32 %v2848_v56, %v1483_v2  ;;  %v2802_v45 = vpop.f32.mrb[66].mxu1  ;;  %v2849_v25 = vpop.f32.mrb[76].mxu0  ;;  %v1493_v35 = vadd.f32 %v2801_v14, %v5284_v9  ;;  %v1995_v2 = vld [vmem:[%s5513_s5 + $0x250] sm:$0xff]  ;;  %v1996_v14 = vld [vmem:[%s5513_s5 + $0x258] sm:$0xff] }
 0x3a2   :  { %v2803_v62 = vpop.f32.mrb[67].mxu1  ;;  %v2850_v31 = vpop.f32.mrb[77].mxu0 }
 0x3a3   :  { %v1608_v29 = vmax.f32 %v1583_v22, 0.0  ;;  %v3922_v62 = vpack.c.bf16 %v2018_v47, %v2017_v46  ;;  %v2019_v31 = vld [vmem:[%s5513_s5 + $0x310] sm:$0xff] }
 0x3a5   :  { %2102 = vmatprep.mubr.f32.mxu1 %v1608_v29  ;;  %v2020_v29 = vld [vmem:[%s5513_s5 + $0x318] sm:$0xff] }
 0x3a6   :  { %2103 = vmatmul.mubr.f32.vlgmr.msra.gmra.mrb[84].mxu1 %v1606_v37  ;;  %v1997_v37 = vld [vmem:[%s5513_s5 + $0x260] sm:$0xff]  ;;  %v3925_v18 = vpack.c.bf16 %v2020_v29, %v2019_v31 }
 0x3a7   :  { %3892 = vmatpush3.bf16.msra.mxu1 %v3891_v30  ;;  %v3911_v30 = vpack.c.bf16 %v1996_v14, %v1995_v2  ;;  %v2028_v2 = vld [vmem:[%s5513_s5 + $0x358] sm:$0xff] }
 0x3a8   :  { %v2805_v59 = vpop.f32.mrb[68].mxu1  ;;  %v2852_v12 = vpop.f32.mrb[78].mxu0  ;;  %3894 = vmatprep.subr.bf16.mxu1 %v3893_v5 }
 0x3a9   :  { %v2806_v49 = vpop.f32.mrb[69].mxu1  ;;  %v2853_v10 = vpop.f32.mrb[79].mxu0 }
 0x3aa   :  { %v2807_v33 = vadd.f32 %v2806_v49, %v2805_v59  ;;  %v2854_v40 = vadd.f32 %v2853_v10, %v2852_v12  ;;  %v3915_v49 = vpack.c.bf16 %v1998_v26, %v1997_v37  ;;  %v3917_v10 = vpack.c.bf16 %v2016_v27, %v2015_v63  ;;  %v2321_v63 = vld [vmem:[%s5514_s6 + $0x10] sm:$0xff]  ;;  %v2322_v27 = vld [vmem:[%s5514_s6 + $0x18] sm:$0xff] }
 0x3ab   :  { %3896 = vmatpush3.bf16.msra.mxu1 %v3895_v17 }
 0x3ac   :  { %v1593_v51 = vadd.f32 %v2854_v40, %v1493_v35  ;;  %3898 = vmatprep.subr.bf16.mxu1 %v3897_v16  ;;  %v1503_v8 = vadd.f32 %v2807_v33, %v5284_v9  ;;  %v2022_v33 = vld [vmem:[%s5513_s5 + $0x328] sm:$0xff]  ;;  %v1999_v40 = vld [vmem:[%s5513_s5 + $0x270] sm:$0xff] }
 0x3ad   :  { %v2855_v28 = vpop.f32.mrb[80].mxu0  ;;  %v3928_v48 = vpack.c.bf16 %v2022_v33, %v2021_v21  ;;  %v2326_v21 = vld [vmem:[%s5514_s6 + $0x38] sm:$0xff] }
 0x3ae   :  { %v2893_v1 = vpop.f32.mrb[70].mxu1  ;;  %v2856_v57 = vpop.f32.mrb[81].mxu0  ;;  %v1610_v5 = vmax.f32 %v1593_v51, 0.0  ;;  %v2330_v33 = vld [vmem:[%s5514_s6 + $0x58] sm:$0xff] }
 0x3af   :  { %v2894_v3 = vpop.f32.mrb[71].mxu1  ;;  %3900 = vmatpush3.bf16.msra.mxu1 %v3899_v0  ;;  %v2000_v0 = vld [vmem:[%s5513_s5 + $0x278] sm:$0xff]  ;;  %v2023_v1 = vld [vmem:[%s5513_s5 + $0x330] sm:$0xff] }
 0x3b0   :  { %3902 = vmatprep.subr.bf16.mxu1 %v3901_v44  ;;  %v3919_v55 = vpack.c.bf16 %v2000_v0, %v1999_v40  ;;  %v2024_v57 = vld [vmem:[%s5513_s5 + $0x338] sm:$0xff]  ;;  %v2331_v0 = vld [vmem:[%s5514_s6 + $0x60] sm:$0xff] }
 0x3b1   :  { %v2858_v13 = vpop.f32.mrb[82].mxu0  ;;  %v3931_v54 = vpack.c.bf16 %v2024_v57, %v2023_v1  ;;  %v2419_v57 = vld [vmem:[%s5510_s7 + $0x4] ss:$0 sm:$0xff] }
 0x3b2   :  { %v2896_v61 = vpop.f32.mrb[72].mxu1  ;;  %v2859_v32 = vpop.f32.mrb[83].mxu0 }
 0x3b3   :  { %v2860_v42 = vadd.f32 %v2859_v32, %v2858_v13  ;;  %v2897_v50 = vpop.f32.mrb[73].mxu1  ;;  %3904 = vmatpush3.bf16.msra.mxu1 %v3903_v20  ;;  %v2026_v32 = vld [vmem:[%s5513_s5 + $0x348] sm:$0xff] }
 0x3b4   :  { %v2898_v11 = vadd.f32 %v2897_v50, %v2896_v61  ;;  %3906 = vmatprep.subr.bf16.mxu1 %v3905_v38  ;;  %v2025_v61 = vld [vmem:[%s5513_s5 + $0x340] sm:$0xff] }
 0x3b5   :  { %v1603_v56 = vadd.f32 %v2860_v42, %v1503_v8 }
 0x3b6   :  { %v2899_v22 = vpop.f32.mrb[74].mxu1  ;;  %v2946_v45 = vpop.f32.mrb[84].mxu0  ;;  %v1772_v36 = vadd.f32 %v2898_v11, %v5284_v9  ;;  %v3934_v11 = vpack.c.bf16 %v2026_v32, %v2025_v61 }
 0x3b7   :  { %v1612_v25 = vmax.f32 %v1603_v56, 0.0  ;;  %v2900_v52 = vpop.f32.mrb[75].mxu1  ;;  %v2947_v24 = vpop.f32.mrb[85].mxu0  ;;  %3908 = vmatpush3.bf16.msra.mxu1 %v3907_v41 }
 0x3b8   :  { %3910 = vmatprep.subr.bf16.mxu1 %v3909_v60  ;;  %v2027_v60 = vld [vmem:[%s5513_s5 + $0x350] sm:$0xff]  ;;  %v2030_v52 = vld [vmem:[%s5513_s5 + $0x368] sm:$0xff] }
 0x3b9   :  { %2172 = vmatprep.mubr.f32.mxu0 %v1612_v25  ;;  %v3937_v19 = vpack.c.bf16 %v2028_v2, %v2027_v60  ;;  %v2029_v25 = vld [vmem:[%s5513_s5 + $0x360] sm:$0xff] }
 0x3ba   :  { %v2902_v17 = vpop.f32.mrb[76].mxu1  ;;  %v2949_v59 = vpop.f32.mrb[86].mxu0  ;;  %2173 = vmatmul.mubr.f32.vlgmr.msra.gmra.mrb[98].mxu0 %v1610_v5  ;;  %v3940_v31 = vpack.c.bf16 %v2030_v52, %v2029_v25  ;;  %v2319_v5 = vld [vmem:[%s5514_s6] sm:$0xff] }
 0x3bb   :  { %v2903_v12 = vpop.f32.mrb[77].mxu1  ;;  %v2950_v16 = vpop.f32.mrb[87].mxu0  ;;  %3923 = vmatpush3.bf16.msra.mxu0 %v3922_v62  ;;  %3912 = vmatpush3.bf16.msra.mxu1 %v3911_v30  ;;  %v2032_v30 = vld [vmem:[%s5513_s5 + $0x378] sm:$0xff] }
 0x3bc   :  { %v2904_v39 = vadd.f32 %v2903_v12, %v2902_v17  ;;  %v2951_v35 = vadd.f32 %v2950_v16, %v2949_v59  ;;  %3924 = vmatprep.subr.bf16.mxu0 %v3972_v6  ;;  %3914 = vmatprep.subr.bf16.mxu1 %v3913_v4  ;;  %v2320_v4 = vld [vmem:[%s5514_s6 + $0x8] sm:$0xff]  ;;  %v3949_v17 = vpack.c.bf16 %v2322_v27, %v2321_v63  ;;  %v2323_v59 = vld [vmem:[%s5514_s6 + $0x20] sm:$0xff] }
 0x3bd   :  { %3403 = vmatprep.mubr.msk.f32.mxu0 %vm3973_vm0, %v3974_v58  ;;  %v3946_v26 = vpack.c.bf16 %v2320_v4, %v2319_v5  ;;  %v2324_v12 = vld [vmem:[%s5514_s6 + $0x28] sm:$0xff] }
 0x3be   :  { %v1872_v51 = vadd.f32 %v2951_v35, %v1772_v36  ;;  %v2905_v44 = vpop.f32.mrb[78].mxu1  ;;  %v2952_v34 = vpop.f32.mrb[88].mxu0  ;;  %v1782_v13 = vadd.f32 %v2904_v39, %v5284_v9  ;;  %v3952_v16 = vpack.c.bf16 %v2324_v12, %v2323_v59  ;;  %v2328_v36 = vld [vmem:[%s5514_s6 + $0x48] sm:$0xff]  ;;  %v2329_v39 = vld [vmem:[%s5514_s6 + $0x50] sm:$0xff] }
 0x3bf   :  { %v2906_v43 = vpop.f32.mrb[79].mxu1  ;;  %v2953_v28 = vpop.f32.mrb[89].mxu0  ;;  %3926 = vmatpush3.bf16.msra.mxu0 %v3925_v18  ;;  %3916 = vmatpush3.bf16.msra.mxu1 %v3915_v49  ;;  %v2325_v18 = vld [vmem:[%s5514_s6 + $0x30] sm:$0xff]  ;;  %v3961_v40 = vpack.c.bf16 %v2330_v33, %v2329_v39 }
 0x3c0   :  { %3927 = vmatprep.subr.bf16.mxu0 %v3972_v6  ;;  %3918 = vmatprep.subr.bf16.mxu1 %v3917_v10  ;;  %v1901_v14 = vmax.f32 %v1872_v51, 0.0  ;;  %v3955_v49 = vpack.c.bf16 %v2326_v21, %v2325_v18  ;;  %v2327_v10 = vld [vmem:[%s5514_s6 + $0x40] sm:$0xff]  ;;  %v2332_v51 = vld [vmem:[%s5514_s6 + $0x68] sm:$0xff]  ;;  %v2333_v34 = vld [vmem:[%s5514_s6 + $0x70] sm:$0xff] }
 0x3c1   :  { %v3958_v35 = vpack.c.bf16 %v2328_v36, %v2327_v10  ;;  %v3964_v44 = vpack.c.bf16 %v2332_v51, %v2331_v0  ;;  %v2334_v43 = vld [vmem:[%s5514_s6 + $0x78] sm:$0xff] }
 0x3c2   :  { %v2908_v3 = vpop.f32.mrb[80].mxu1  ;;  %v2955_v20 = vpop.f32.mrb[90].mxu0  ;;  %v3967_v28 = vpack.c.bf16 %v2334_v43, %v2333_v34 }
 0x3c3   :  { %v2909_v38 = vpop.f32.mrb[81].mxu1  ;;  %v2956_v15 = vpop.f32.mrb[91].mxu0  ;;  %3929 = vmatpush3.bf16.msra.mxu0 %v3928_v48  ;;  %3920 = vmatpush3.bf16.msra.mxu1 %v3919_v55 }
 0x3c4   :  { %v2910_v7 = vadd.f32 %v2909_v38, %v2908_v3  ;;  %v2957_v53 = vadd.f32 %v2956_v15, %v2955_v20  ;;  %3930 = vmatprep.subr.bf16.mxu0 %v3972_v6  ;;  %3945 = vmatprep.subr.bf16.mxu1 %v3972_v6 }
 0x3c6   :  { %v1882_v8 = vadd.f32 %v2957_v53, %v1782_v13  ;;  %v2911_v42 = vpop.f32.mrb[82].mxu1  ;;  %v2958_v50 = vpop.f32.mrb[92].mxu0  ;;  %v1792_v22 = vadd.f32 %v2910_v7, %v5284_v9  ;;  %v2031_v9 = vld [vmem:[%s5513_s5 + $0x370] sm:$0xff] }
 0x3c7   :  { %v2912_v46 = vpop.f32.mrb[83].mxu1  ;;  %v2959_v41 = vpop.f32.mrb[93].mxu0  ;;  %3932 = vmatpush3.bf16.msra.mxu0 %v3931_v54  ;;  %v3943_v37 = vpack.c.bf16 %v2032_v30, %v2031_v9  ;;  %v2420_v50 = vld [vmem:[%s5510_s7 + $0x5] ss:$0 sm:$0xff] }
 0x3c8   :  { %v1903_v47 = vmax.f32 %v1882_v8, 0.0  ;;  %3933 = vmatprep.subr.bf16.mxu0 %v3972_v6 }
 0x3ca   :  { %v2961_v56 = vpop.f32.mrb[94].mxu0  ;;  %2242 = vmatprep.mubr.f32.mxu1 %v1903_v47 }
 0x3cb   :  { %v2962_v23 = vpop.f32.mrb[95].mxu0  ;;  %2243 = vmatmul.mubr.f32.vlgmr.msra.gmra.mrb[86].mxu1 %v1901_v14  ;;  %3935 = vmatpush3.bf16.msra.mxu0 %v3934_v11 }
 0x3cc   :  { %v2963_v45 = vadd.f32 %v2962_v23, %v2961_v56  ;;  %3936 = vmatprep.subr.bf16.mxu0 %v3972_v6  ;;  %3438 = vmatprep.mubr.msk.f32.mxu1 %vm3973_vm0, %v3974_v58 }
 0x3cd   :  { %3947 = vmatpush3.bf16.msra.mxu1 %v3946_v26 }
 0x3ce   :  { %v1892_v24 = vadd.f32 %v2963_v45, %v1792_v22  ;;  %v2964_v62 = vpop.f32.mrb[96].mxu0  ;;  %3948 = vmatprep.subr.bf16.mxu1 %v3972_v6 }
 0x3cf   :  { %3938 = vmatpush3.bf16.msra.mxu0 %v3937_v19  ;;  %v2965_v29 = vpop.f32.mrb[97].mxu0 }
 0x3d0   :  { %3939 = vmatprep.subr.bf16.mxu0 %v3972_v6  ;;  %v1905_v58 = vmax.f32 %v1892_v24, 0.0 }
 0x3d1   :  { %3950 = vmatpush3.bf16.msra.mxu1 %v3949_v17 }
 0x3d2   :  { %3951 = vmatprep.subr.bf16.mxu1 %v3972_v6 }
 0x3d3   :  { %3941 = vmatpush3.bf16.msra.mxu0 %v3940_v31 }
 0x3d4   :  { %3942 = vmatprep.subr.bf16.mxu0 %v3972_v6 }
 0x3d5   :  { %3953 = vmatpush3.bf16.msra.mxu1 %v3952_v16 }
 0x3d6   :  { %3954 = vmatprep.subr.bf16.mxu1 %v3972_v6 }
 0x3d7   :  { %3944 = vmatpush3.bf16.msra.mxu0 %v3943_v37 }
 0x3d9   :  { %3956 = vmatpush3.bf16.msra.mxu1 %v3955_v49 }
 0x3da   :  { %3404 = vmatmul.mubr.f32.vlgmr.msra.gmra.mrb[100].mxu0 %v1905_v58  ;;  %3957 = vmatprep.subr.bf16.mxu1 %v3972_v6 }
 0x3dd   :  { %3959 = vmatpush3.bf16.msra.mxu1 %v3958_v35 }
 0x3de   :  { %3960 = vmatprep.subr.bf16.mxu1 %v3972_v6 }
 0x3e1   :  { %3962 = vmatpush3.bf16.msra.mxu1 %v3961_v40 }
 0x3e2   :  { %3963 = vmatprep.subr.bf16.mxu1 %v3972_v6 }
 0x3e5   :  { %3965 = vmatpush3.bf16.msra.mxu1 %v3964_v44 }
 0x3e6   :  { %3966 = vmatprep.subr.bf16.mxu1 %v3972_v6 }
 0x3e9   :  { %3968 = vmatpush3.bf16.msra.mxu1 %v3967_v28 }
 0x479   :  { %v2999_v48 = vpop.f32.mrb[84].mxu1 }
 0x47a   :  { %v3000_v55 = vpop.f32.mrb[85].mxu1 }
 0x47b   :  { %v3001_v1 = vadd.f32 %v3000_v55, %v2999_v48 }
 0x47d   :  { %v2105_v6 = vadd.f32 %v3001_v1, %v2419_v57 }
 0x48d   :  { %v3034_v3 = vpop.f32.mrb[98].mxu0 }
 0x48e   :  { %v3035_v20 = vpop.f32.mrb[99].mxu0 }
 0x48f   :  { %v3036_v38 = vadd.f32 %v3035_v20, %v3034_v3 }
 0x491   :  { %v2175_v15 = vadd.f32 %v3036_v38, %v2105_v6 }
 0x49e   :  { %v3069_v54 = vpop.f32.mrb[86].mxu1 }
 0x49f   :  { %v3070_v13 = vpop.f32.mrb[87].mxu1 }
 0x4a0   :  { %v3071_v7 = vadd.f32 %v3070_v13, %v3069_v54 }
 0x4a2   :  { %v2245_v53 = vadd.f32 %v3071_v7, %v2175_v15 }
 0x4ad   :  { %v2314_v61 = vpop.f32.mrb[100].mxu0 }
 0x4ae   :  { %v2315_v32 = vadd.f32 %v2314_v61, %v2245_v53  ;;  %v3405_v8 = vpop.f32.mrb[101].mxu0 }
 0x4b0   :  { %v2318_v42 = vmax.f32 %v2315_v32, 0.0 }
 0x4b2   :  { %3439 = vmatmul.mubr.f32.vlgmr.msra.gmra.mrb[88].mxu1 %v2318_v42 }
 0x585   :  { %v2406_v46 = vpop.f32.mrb[88].mxu1 }
 0x586   :  { %v2407_v41 = vadd.f32 %v2420_v50, %v2406_v46  ;;  %v3440_v11 = vpop.f32.mrb[89].mxu1 }
 0x588   :  { %2410 = vst [vmem:[%s5515_s8] sm:$0xff] %v2407_v41 }

</bundles_post_ra>
